<compile_context>
chip_gen: v5e
topology: v5e:2x2
jax: 0.10.0
libtpu: 0.0.40
codegen_flags: <defaults>
</compile_context>

<pallas_src>
import jax
import jax.numpy as jnp
from jax import lax
from jax.experimental import pallas as pl
from jax.experimental.pallas import tpu as pltpu

# --- module configuration (synthetic, deterministic) -------------------------
C_IN = 16
C_OUT = 32                    # must be divisible by N_GROUPS (=16)
KERNEL_SIZES = (3, 5, 7)
DILATION = 2
N_GROUPS = 16
GN_EPS = 1e-5

N = 2
L = 128

NB = len(KERNEL_SIZES)
SUMK = sum(KERNEL_SIZES)
PADS = tuple((k - 1) * DILATION // 2 for k in KERNEL_SIZES)
PAD_MAX = max(PADS)
# lane-aligned padded length (>= L + 2*PAD_MAX, multiple of 128)
LP_AL = -(-(L + 2 * PAD_MAX) // 128) * 128
# unique dilated tap offsets shared across branches (+ the unpadded window)
WIN_OFFSETS = tuple(sorted(
    {(PAD_MAX - PADS[b]) + j * DILATION
     for b, k in enumerate(KERNEL_SIZES) for j in range(k)} | {PAD_MAX}))


# --- Pallas kernel ------------------------------------------------------------
def msrb_kernel(x_ref, dw_ref, pw_ref, fw_ref, ainv_ref, vec_ref, o_ref):
    x = x_ref[...]                                # (C_IN, LP_AL) padded input
    dw_pack = dw_ref[...]                         # (C_IN, SUMK + NB)
    pw_pack = pw_ref[...]                         # (NB*C_OUT, C_IN)
    w_big = fw_ref[...]                           # (C_OUT, NB*C_OUT + C_IN)
    ainv = ainv_ref[...]                          # (C_OUT, C_OUT), scaled 1/cnt
    vec = vec_ref[...]                            # (C_OUT, 3*NB + 1)

    # precompute the unique shifted windows once (7 slices instead of 15)
    wins = {s: x[:, s:s + L] for s in WIN_OFFSETS}
    xc = wins[PAD_MAX]                            # (C_IN, L) unpadded window

    # --- per-branch depthwise (dilated) + pointwise 1x1 conv -----------------
    pws = []
    col = 0
    for b, k in enumerate(KERNEL_SIZES):
        off0 = PAD_MAX - PADS[b]
        dw = wins[off0] * dw_pack[:, col:col + 1]
        for j in range(1, k):
            dw = dw + wins[off0 + j * DILATION] * dw_pack[:, col + j:col + j + 1]
        col += k
        dw = dw + dw_pack[:, SUMK + b:SUMK + b + 1]          # depthwise bias
        pw = jnp.dot(pw_pack[b * C_OUT:(b + 1) * C_OUT, :], dw,
                     preferred_element_type=jnp.float32)     # (C_OUT, L)
        pw = pw + vec[:, 2 * NB + b:2 * NB + b + 1]          # pointwise bias
        pws.append(pw)

    # --- GroupNorm stats for all branches in one tiny GEMM -------------------
    s_cols = []
    for pw in pws:
        s_cols.append(jnp.sum(pw, axis=1, keepdims=True))
        s_cols.append(jnp.sum(pw * pw, axis=1, keepdims=True))
    stats = jnp.dot(ainv, jnp.concatenate(s_cols, axis=1),
                    preferred_element_type=jnp.float32)      # (C_OUT, 2*NB)

    ys = []
    for b in range(NB):
        mean = stats[:, 2 * b:2 * b + 1]
        var = stats[:, 2 * b + 1:2 * b + 2] - mean * mean
        y = (pws[b] - mean) * lax.rsqrt(var + GN_EPS)
        y = y * vec[:, b:b + 1] + vec[:, NB + b:NB + b + 1]  # gamma / beta
        ys.append(jnp.maximum(y, 0.0))                       # ReLU

    # --- fuse conv + folded residual path as one GEMM ------------------------
    cat = jnp.concatenate(ys + [xc], axis=0)                 # (NB*C_OUT+C_IN, L)
    fused = jnp.dot(w_big, cat, preferred_element_type=jnp.float32)
    fused = fused + vec[:, 3 * NB:3 * NB + 1]                # folded bias
    o_ref[...] = fused


# --- host-side parameter packing -----------------------------------------------
def _pack_params(params):
    hi = lax.Precision.HIGHEST
    br = params["branches"]

    # depthwise taps (concatenated over branches) + depthwise biases
    dw_pack = jnp.concatenate(
        [bp["dw_w"] for bp in br] + [bp["dw_b"] for bp in br], axis=1)

    # stacked pointwise weights: (NB*C_OUT, C_IN)
    pw_pack = jnp.concatenate([bp["pw_w"] for bp in br], axis=0)

    # fold the residual 1x1 convs into the fuse conv
    fuse_w = params["fuse_w"]                                # (C_OUT, NB*C_OUT)
    res_w_eff = jnp.zeros((C_OUT, C_IN), jnp.float32)
    bias_eff = params["fuse_b"]                              # (C_OUT, 1)
    for b, bp in enumerate(br):
        fw_b = fuse_w[:, b * C_OUT:(b + 1) * C_OUT]
        res_w_eff = res_w_eff + jnp.einsum("oc,ci->oi", fw_b, bp["res_w"],
                                           precision=hi)
        bias_eff = bias_eff + jnp.einsum("oc,cd->od", fw_b, bp["res_b"],
                                         precision=hi)
    fw_pack = jnp.concatenate([fuse_w, res_w_eff], axis=1)   # (C_OUT, NB*C_OUT+C_IN)

    # group-aggregation matrix, pre-scaled by 1/(group_size * L)
    gsize = C_OUT // N_GROUPS
    gid = jnp.arange(C_OUT) // gsize
    ainv = (gid[:, None] == gid[None, :]).astype(jnp.float32) / float(gsize * L)

    # per-channel vectors: [gamma x NB | beta x NB | pw_b x NB | bias_eff]
    vec_pack = jnp.concatenate(
        [bp["gamma"] for bp in br] + [bp["beta"] for bp in br] +
        [bp["pw_b"] for bp in br] + [bias_eff], axis=1)      # (C_OUT, 3*NB+1)

    return dw_pack, pw_pack, fw_pack, ainv, vec_pack


# --- wrapper ------------------------------------------------------------------
def multi_scale_residual_block(x, params):
    n = x.shape[0]
    # left pad PAD_MAX, right pad up to lane-aligned LP_AL (zeros)
    x_pad = jnp.pad(x, ((0, 0), (0, 0), (PAD_MAX, LP_AL - L - PAD_MAX)))

    dw_pack, pw_pack, fw_pack, ainv, vec_pack = _pack_params(params)

    def const_spec(arr):
        return pl.BlockSpec(arr.shape, lambda i: (0, 0))

    return pl.pallas_call(
        msrb_kernel,
        out_shape=jax.ShapeDtypeStruct((n, C_OUT, L), jnp.float32),
        grid_spec=pltpu.PrefetchScalarGridSpec(
            num_scalar_prefetch=0,
            grid=(n,),
            in_specs=[
                pl.BlockSpec((None, C_IN, LP_AL), lambda i: (i, 0, 0)),
                const_spec(dw_pack),
                const_spec(pw_pack),
                const_spec(fw_pack),
                const_spec(ainv),
                const_spec(vec_pack),
            ],
            out_specs=pl.BlockSpec((None, C_OUT, L), lambda i: (i, 0, 0)),
        ),
        compiler_params=pltpu.CompilerParams(
            dimension_semantics=("parallel",)),
    )(x_pad, dw_pack, pw_pack, fw_pack, ainv, vec_pack)


# --- pure-JAX reference (for correctness check) --------------------------------
def ref_forward(x, params):
    hi = lax.Precision.HIGHEST
    outs = []
    for b, k in enumerate(KERNEL_SIZES):
        bp = params["branches"][b]
        pad = PADS[b]
        dw_w = bp["dw_w"].reshape(C_IN, 1, k)
        y = lax.conv_general_dilated(
            x, dw_w, window_strides=(1,), padding=[(pad, pad)],
            rhs_dilation=(DILATION,), feature_group_count=C_IN,
            dimension_numbers=("NCH", "OIH", "NCH"), precision=hi)
        y = y + bp["dw_b"].reshape(1, C_IN, 1)
        y = jnp.einsum("oc,ncl->nol", bp["pw_w"], y, precision=hi)
        y = y + bp["pw_b"].reshape(1, C_OUT, 1)
        yg = y.reshape(y.shape[0], N_GROUPS, C_OUT // N_GROUPS, y.shape[-1])
        mean = yg.mean(axis=(2, 3), keepdims=True)
        var = yg.var(axis=(2, 3), keepdims=True)
        yn = ((yg - mean) / jnp.sqrt(var + GN_EPS)).reshape(y.shape)
        yn = yn * bp["gamma"].reshape(1, C_OUT, 1) + bp["beta"].reshape(1, C_OUT, 1)
        yn = jnp.maximum(yn, 0.0)
        resid = jnp.einsum("oc,ncl->nol", bp["res_w"], x, precision=hi)
        resid = resid + bp["res_b"].reshape(1, C_OUT, 1)
        outs.append(yn + resid)
    cat = jnp.concatenate(outs, axis=1)
    fused = jnp.einsum("oc,ncl->nol", params["fuse_w"], cat, precision=hi)
    return fused + params["fuse_b"].reshape(1, C_OUT, 1)


# --- deterministic parameter construction ---------------------------------------
def make_params(key):
    params = {"branches": []}
    for k in KERNEL_SIZES:
        key, *sub = jax.random.split(key, 9)
        bp = {
            "dw_w": 0.2 * jax.random.normal(sub[0], (C_IN, k), jnp.float32),
            "dw_b": 0.1 * jax.random.normal(sub[1], (C_IN, 1), jnp.float32),
            "pw_w": 0.2 * jax.random.normal(sub[2], (C_OUT, C_IN), jnp.float32),
            "pw_b": 0.1 * jax.random.normal(sub[3], (C_OUT, 1), jnp.float32),
            "gamma": 1.0 + 0.1 * jax.random.normal(sub[4], (C_OUT, 1), jnp.float32),
            "beta": 0.1 * jax.random.normal(sub[5], (C_OUT, 1), jnp.float32),
            "res_w": 0.2 * jax.random.normal(sub[6], (C_OUT, C_IN), jnp.float32),
            "res_b": 0.1 * jax.random.normal(sub[7], (C_OUT, 1), jnp.float32),
        }
        params["branches"].append(bp)
    key, k1, k2 = jax.random.split(key, 3)
    params["fuse_w"] = 0.2 * jax.random.normal(
        k1, (C_OUT, len(KERNEL_SIZES) * C_OUT), jnp.float32)
    params["fuse_b"] = 0.1 * jax.random.normal(k2, (C_OUT, 1), jnp.float32)
    return params


if __name__ == "__main__":
    key = jax.random.PRNGKey(0)
    key_x, key_p = jax.random.split(key)
    x = jax.random.normal(key_x, (N, C_IN, L), jnp.float32)
    params = make_params(key_p)

    out = multi_scale_residual_block(x, params)
    out = jax.block_until_ready(out)

    ref = jax.block_until_ready(ref_forward(x, params))
    err = float(jnp.max(jnp.abs(out - ref)))
    scale = float(jnp.max(jnp.abs(ref))) + 1e-6
    assert out.shape == (N, C_OUT, L)
    assert err <= 1e-2 * scale, f"mismatch: max abs err {err} vs scale {scale}"

    print("KERNEL_OK")
</pallas_src>

<mosaic_0001>
module attributes {stable_mosaic.version = 11 : i64} {
  func.func @msrb_kernel(%arg0: i32, %arg1: memref<1x16x256xf32, #tpu.memory_space<vmem>>, %arg2: memref<16x18xf32, #tpu.memory_space<vmem>>, %arg3: memref<96x16xf32, #tpu.memory_space<vmem>>, %arg4: memref<32x112xf32, #tpu.memory_space<vmem>>, %arg5: memref<32x32xf32, #tpu.memory_space<vmem>>, %arg6: memref<32x10xf32, #tpu.memory_space<vmem>>, %arg7: memref<1x32x128xf32, #tpu.memory_space<vmem>>) attributes {dimension_semantics = [#tpu.dimension_semantics<parallel>], iteration_bounds = array<i64: 2>, scalar_prefetch = 0 : i64, scratch_operands = 0 : i64, tpu.core_type = #tpu.core_type<tc>, window_params = [{transform_indices = @transform_0, window_bounds = array<i64: 1, 16, 256>}, {pipeline_mode = #tpu.pipeline_mode<synchronous>, transform_indices = @transform_1, window_bounds = array<i64: 16, 18>}, {pipeline_mode = #tpu.pipeline_mode<synchronous>, transform_indices = @transform_2, window_bounds = array<i64: 96, 16>}, {pipeline_mode = #tpu.pipeline_mode<synchronous>, transform_indices = @transform_3, window_bounds = array<i64: 32, 112>}, {pipeline_mode = #tpu.pipeline_mode<synchronous>, transform_indices = @transform_4, window_bounds = array<i64: 32, 32>}, {pipeline_mode = #tpu.pipeline_mode<synchronous>, transform_indices = @transform_5, window_bounds = array<i64: 32, 10>}, {transform_indices = @transform_6, window_bounds = array<i64: 1, 32, 128>}]} {
    %c0 = arith.constant 0 : index
    %c0_0 = arith.constant 0 : index
    %c0_1 = arith.constant 0 : index
    %0 = vector.load %arg1[%c0, %c0_0, %c0_1] : memref<1x16x256xf32, #tpu.memory_space<vmem>>, vector<1x16x256xf32>
    %1 = vector.shape_cast %0 : vector<1x16x256xf32> to vector<16x256xf32>
    %c0_2 = arith.constant 0 : index
    %c0_3 = arith.constant 0 : index
    %2 = vector.load %arg2[%c0_2, %c0_3] : memref<16x18xf32, #tpu.memory_space<vmem>>, vector<16x18xf32>
    %c0_4 = arith.constant 0 : index
    %c0_5 = arith.constant 0 : index
    %3 = vector.load %arg3[%c0_4, %c0_5] : memref<96x16xf32, #tpu.memory_space<vmem>>, vector<96x16xf32>
    %c0_6 = arith.constant 0 : index
    %c0_7 = arith.constant 0 : index
    %4 = vector.load %arg4[%c0_6, %c0_7] : memref<32x112xf32, #tpu.memory_space<vmem>>, vector<32x112xf32>
    %c0_8 = arith.constant 0 : index
    %c0_9 = arith.constant 0 : index
    %5 = vector.load %arg5[%c0_8, %c0_9] : memref<32x32xf32, #tpu.memory_space<vmem>>, vector<32x32xf32>
    %c0_10 = arith.constant 0 : index
    %c0_11 = arith.constant 0 : index
    %6 = vector.load %arg6[%c0_10, %c0_11] : memref<32x10xf32, #tpu.memory_space<vmem>>, vector<32x10xf32>
    %7 = vector.extract_strided_slice %1 {offsets = [0, 0], sizes = [16, 128], strides = [1, 1]} : vector<16x256xf32> to vector<16x128xf32>
    %8 = vector.extract_strided_slice %1 {offsets = [0, 2], sizes = [16, 128], strides = [1, 1]} : vector<16x256xf32> to vector<16x128xf32>
    %9 = vector.extract_strided_slice %1 {offsets = [0, 4], sizes = [16, 128], strides = [1, 1]} : vector<16x256xf32> to vector<16x128xf32>
    %10 = vector.extract_strided_slice %1 {offsets = [0, 6], sizes = [16, 128], strides = [1, 1]} : vector<16x256xf32> to vector<16x128xf32>
    %11 = vector.extract_strided_slice %1 {offsets = [0, 8], sizes = [16, 128], strides = [1, 1]} : vector<16x256xf32> to vector<16x128xf32>
    %12 = vector.extract_strided_slice %1 {offsets = [0, 10], sizes = [16, 128], strides = [1, 1]} : vector<16x256xf32> to vector<16x128xf32>
    %13 = vector.extract_strided_slice %1 {offsets = [0, 12], sizes = [16, 128], strides = [1, 1]} : vector<16x256xf32> to vector<16x128xf32>
    %14 = vector.extract_strided_slice %2 {offsets = [0, 0], sizes = [16, 1], strides = [1, 1]} : vector<16x18xf32> to vector<16x1xf32>
    %15 = vector.broadcast %14 : vector<16x1xf32> to vector<16x128xf32>
    %16 = arith.mulf %9, %15 : vector<16x128xf32>
    %17 = vector.extract_strided_slice %2 {offsets = [0, 1], sizes = [16, 1], strides = [1, 1]} : vector<16x18xf32> to vector<16x1xf32>
    %18 = vector.broadcast %17 : vector<16x1xf32> to vector<16x128xf32>
    %19 = arith.mulf %10, %18 : vector<16x128xf32>
    %20 = arith.addf %16, %19 : vector<16x128xf32>
    %21 = vector.extract_strided_slice %2 {offsets = [0, 2], sizes = [16, 1], strides = [1, 1]} : vector<16x18xf32> to vector<16x1xf32>
    %22 = vector.broadcast %21 : vector<16x1xf32> to vector<16x128xf32>
    %23 = arith.mulf %11, %22 : vector<16x128xf32>
    %24 = arith.addf %20, %23 : vector<16x128xf32>
    %25 = vector.extract_strided_slice %2 {offsets = [0, 15], sizes = [16, 1], strides = [1, 1]} : vector<16x18xf32> to vector<16x1xf32>
    %26 = vector.broadcast %25 : vector<16x1xf32> to vector<16x128xf32>
    %27 = arith.addf %24, %26 : vector<16x128xf32>
    %28 = vector.extract_strided_slice %3 {offsets = [0, 0], sizes = [32, 16], strides = [1, 1]} : vector<96x16xf32> to vector<32x16xf32>
    %cst = arith.constant dense<0.000000e+00> : vector<32x128xf32>
    %29 = tpu.matmul %28, %27, %cst {dimension_numbers = #tpu.dot_dimension_numbers<[1], [0], [0], [1], [0, 0, 1, 1], [], []>} : vector<32x16xf32>, vector<16x128xf32>, vector<32x128xf32> -> vector<32x128xf32>
    %30 = vector.extract_strided_slice %6 {offsets = [0, 6], sizes = [32, 1], strides = [1, 1]} : vector<32x10xf32> to vector<32x1xf32>
    %31 = vector.broadcast %30 : vector<32x1xf32> to vector<32x128xf32>
    %32 = arith.addf %29, %31 : vector<32x128xf32>
    %33 = vector.extract_strided_slice %2 {offsets = [0, 3], sizes = [16, 1], strides = [1, 1]} : vector<16x18xf32> to vector<16x1xf32>
    %34 = vector.broadcast %33 : vector<16x1xf32> to vector<16x128xf32>
    %35 = arith.mulf %8, %34 : vector<16x128xf32>
    %36 = vector.extract_strided_slice %2 {offsets = [0, 4], sizes = [16, 1], strides = [1, 1]} : vector<16x18xf32> to vector<16x1xf32>
    %37 = vector.broadcast %36 : vector<16x1xf32> to vector<16x128xf32>
    %38 = arith.mulf %9, %37 : vector<16x128xf32>
    %39 = arith.addf %35, %38 : vector<16x128xf32>
    %40 = vector.extract_strided_slice %2 {offsets = [0, 5], sizes = [16, 1], strides = [1, 1]} : vector<16x18xf32> to vector<16x1xf32>
    %41 = vector.broadcast %40 : vector<16x1xf32> to vector<16x128xf32>
    %42 = arith.mulf %10, %41 : vector<16x128xf32>
    %43 = arith.addf %39, %42 : vector<16x128xf32>
    %44 = vector.extract_strided_slice %2 {offsets = [0, 6], sizes = [16, 1], strides = [1, 1]} : vector<16x18xf32> to vector<16x1xf32>
    %45 = vector.broadcast %44 : vector<16x1xf32> to vector<16x128xf32>
    %46 = arith.mulf %11, %45 : vector<16x128xf32>
    %47 = arith.addf %43, %46 : vector<16x128xf32>
    %48 = vector.extract_strided_slice %2 {offsets = [0, 7], sizes = [16, 1], strides = [1, 1]} : vector<16x18xf32> to vector<16x1xf32>
    %49 = vector.broadcast %48 : vector<16x1xf32> to vector<16x128xf32>
    %50 = arith.mulf %12, %49 : vector<16x128xf32>
    %51 = arith.addf %47, %50 : vector<16x128xf32>
    %52 = vector.extract_strided_slice %2 {offsets = [0, 16], sizes = [16, 1], strides = [1, 1]} : vector<16x18xf32> to vector<16x1xf32>
    %53 = vector.broadcast %52 : vector<16x1xf32> to vector<16x128xf32>
    %54 = arith.addf %51, %53 : vector<16x128xf32>
    %55 = vector.extract_strided_slice %3 {offsets = [32, 0], sizes = [32, 16], strides = [1, 1]} : vector<96x16xf32> to vector<32x16xf32>
    %cst_12 = arith.constant dense<0.000000e+00> : vector<32x128xf32>
    %56 = tpu.matmul %55, %54, %cst_12 {dimension_numbers = #tpu.dot_dimension_numbers<[1], [0], [0], [1], [0, 0, 1, 1], [], []>} : vector<32x16xf32>, vector<16x128xf32>, vector<32x128xf32> -> vector<32x128xf32>
    %57 = vector.extract_strided_slice %6 {offsets = [0, 7], sizes = [32, 1], strides = [1, 1]} : vector<32x10xf32> to vector<32x1xf32>
    %58 = vector.broadcast %57 : vector<32x1xf32> to vector<32x128xf32>
    %59 = arith.addf %56, %58 : vector<32x128xf32>
    %60 = vector.extract_strided_slice %2 {offsets = [0, 8], sizes = [16, 1], strides = [1, 1]} : vector<16x18xf32> to vector<16x1xf32>
    %61 = vector.broadcast %60 : vector<16x1xf32> to vector<16x128xf32>
    %62 = arith.mulf %7, %61 : vector<16x128xf32>
    %63 = vector.extract_strided_slice %2 {offsets = [0, 9], sizes = [16, 1], strides = [1, 1]} : vector<16x18xf32> to vector<16x1xf32>
    %64 = vector.broadcast %63 : vector<16x1xf32> to vector<16x128xf32>
    %65 = arith.mulf %8, %64 : vector<16x128xf32>
    %66 = arith.addf %62, %65 : vector<16x128xf32>
    %67 = vector.extract_strided_slice %2 {offsets = [0, 10], sizes = [16, 1], strides = [1, 1]} : vector<16x18xf32> to vector<16x1xf32>
    %68 = vector.broadcast %67 : vector<16x1xf32> to vector<16x128xf32>
    %69 = arith.mulf %9, %68 : vector<16x128xf32>
    %70 = arith.addf %66, %69 : vector<16x128xf32>
    %71 = vector.extract_strided_slice %2 {offsets = [0, 11], sizes = [16, 1], strides = [1, 1]} : vector<16x18xf32> to vector<16x1xf32>
    %72 = vector.broadcast %71 : vector<16x1xf32> to vector<16x128xf32>
    %73 = arith.mulf %10, %72 : vector<16x128xf32>
    %74 = arith.addf %70, %73 : vector<16x128xf32>
    %75 = vector.extract_strided_slice %2 {offsets = [0, 12], sizes = [16, 1], strides = [1, 1]} : vector<16x18xf32> to vector<16x1xf32>
    %76 = vector.broadcast %75 : vector<16x1xf32> to vector<16x128xf32>
    %77 = arith.mulf %11, %76 : vector<16x128xf32>
    %78 = arith.addf %74, %77 : vector<16x128xf32>
    %79 = vector.extract_strided_slice %2 {offsets = [0, 13], sizes = [16, 1], strides = [1, 1]} : vector<16x18xf32> to vector<16x1xf32>
    %80 = vector.broadcast %79 : vector<16x1xf32> to vector<16x128xf32>
    %81 = arith.mulf %12, %80 : vector<16x128xf32>
    %82 = arith.addf %78, %81 : vector<16x128xf32>
    %83 = vector.extract_strided_slice %2 {offsets = [0, 14], sizes = [16, 1], strides = [1, 1]} : vector<16x18xf32> to vector<16x1xf32>
    %84 = vector.broadcast %83 : vector<16x1xf32> to vector<16x128xf32>
    %85 = arith.mulf %13, %84 : vector<16x128xf32>
    %86 = arith.addf %82, %85 : vector<16x128xf32>
    %87 = vector.extract_strided_slice %2 {offsets = [0, 17], sizes = [16, 1], strides = [1, 1]} : vector<16x18xf32> to vector<16x1xf32>
    %88 = vector.broadcast %87 : vector<16x1xf32> to vector<16x128xf32>
    %89 = arith.addf %86, %88 : vector<16x128xf32>
    %90 = vector.extract_strided_slice %3 {offsets = [64, 0], sizes = [32, 16], strides = [1, 1]} : vector<96x16xf32> to vector<32x16xf32>
    %cst_13 = arith.constant dense<0.000000e+00> : vector<32x128xf32>
    %91 = tpu.matmul %90, %89, %cst_13 {dimension_numbers = #tpu.dot_dimension_numbers<[1], [0], [0], [1], [0, 0, 1, 1], [], []>} : vector<32x16xf32>, vector<16x128xf32>, vector<32x128xf32> -> vector<32x128xf32>
    %92 = vector.extract_strided_slice %6 {offsets = [0, 8], sizes = [32, 1], strides = [1, 1]} : vector<32x10xf32> to vector<32x1xf32>
    %93 = vector.broadcast %92 : vector<32x1xf32> to vector<32x128xf32>
    %94 = arith.addf %91, %93 : vector<32x128xf32>
    %cst_14 = arith.constant dense<0.000000e+00> : vector<32xf32>
    %95 = vector.multi_reduction <add>, %32, %cst_14 [1] : vector<32x128xf32> to vector<32xf32>
    %96 = vector.shape_cast %95 : vector<32xf32> to vector<32x1xf32>
    %97 = arith.mulf %32, %32 : vector<32x128xf32>
    %cst_15 = arith.constant dense<0.000000e+00> : vector<32xf32>
    %98 = vector.multi_reduction <add>, %97, %cst_15 [1] : vector<32x128xf32> to vector<32xf32>
    %99 = vector.shape_cast %98 : vector<32xf32> to vector<32x1xf32>
    %cst_16 = arith.constant dense<0.000000e+00> : vector<32xf32>
    %100 = vector.multi_reduction <add>, %59, %cst_16 [1] : vector<32x128xf32> to vector<32xf32>
    %101 = vector.shape_cast %100 : vector<32xf32> to vector<32x1xf32>
    %102 = arith.mulf %59, %59 : vector<32x128xf32>
    %cst_17 = arith.constant dense<0.000000e+00> : vector<32xf32>
    %103 = vector.multi_reduction <add>, %102, %cst_17 [1] : vector<32x128xf32> to vector<32xf32>
    %104 = vector.shape_cast %103 : vector<32xf32> to vector<32x1xf32>
    %cst_18 = arith.constant dense<0.000000e+00> : vector<32xf32>
    %105 = vector.multi_reduction <add>, %94, %cst_18 [1] : vector<32x128xf32> to vector<32xf32>
    %106 = vector.shape_cast %105 : vector<32xf32> to vector<32x1xf32>
    %107 = arith.mulf %94, %94 : vector<32x128xf32>
    %cst_19 = arith.constant dense<0.000000e+00> : vector<32xf32>
    %108 = vector.multi_reduction <add>, %107, %cst_19 [1] : vector<32x128xf32> to vector<32xf32>
    %109 = vector.shape_cast %108 : vector<32xf32> to vector<32x1xf32>
    %110 = tpu.concatenate %96, %99, %101, %104, %106, %109 in 1 : vector<32x1xf32>, vector<32x1xf32>, vector<32x1xf32>, vector<32x1xf32>, vector<32x1xf32>, vector<32x1xf32> -> vector<32x6xf32>
    %cst_20 = arith.constant dense<0.000000e+00> : vector<32x6xf32>
    %111 = tpu.matmul %5, %110, %cst_20 {dimension_numbers = #tpu.dot_dimension_numbers<[1], [0], [0], [1], [0, 0, 1, 1], [], []>} : vector<32x32xf32>, vector<32x6xf32>, vector<32x6xf32> -> vector<32x6xf32>
    %112 = vector.extract_strided_slice %111 {offsets = [0, 0], sizes = [32, 1], strides = [1, 1]} : vector<32x6xf32> to vector<32x1xf32>
    %113 = vector.extract_strided_slice %111 {offsets = [0, 1], sizes = [32, 1], strides = [1, 1]} : vector<32x6xf32> to vector<32x1xf32>
    %114 = arith.mulf %112, %112 : vector<32x1xf32>
    %115 = arith.subf %113, %114 : vector<32x1xf32>
    %116 = vector.broadcast %112 : vector<32x1xf32> to vector<32x128xf32>
    %117 = arith.subf %32, %116 : vector<32x128xf32>
    %cst_21 = arith.constant 9.99999974E-6 : f32
    %118 = vector.broadcast %cst_21 : f32 to vector<32x1xf32>
    %119 = arith.addf %115, %118 : vector<32x1xf32>
    %120 = math.rsqrt %119 : vector<32x1xf32>
    %121 = vector.broadcast %120 : vector<32x1xf32> to vector<32x128xf32>
    %122 = arith.mulf %117, %121 : vector<32x128xf32>
    %123 = vector.extract_strided_slice %6 {offsets = [0, 0], sizes = [32, 1], strides = [1, 1]} : vector<32x10xf32> to vector<32x1xf32>
    %124 = vector.broadcast %123 : vector<32x1xf32> to vector<32x128xf32>
    %125 = arith.mulf %122, %124 : vector<32x128xf32>
    %126 = vector.extract_strided_slice %6 {offsets = [0, 3], sizes = [32, 1], strides = [1, 1]} : vector<32x10xf32> to vector<32x1xf32>
    %127 = vector.broadcast %126 : vector<32x1xf32> to vector<32x128xf32>
    %128 = arith.addf %125, %127 : vector<32x128xf32>
    %cst_22 = arith.constant 0.000000e+00 : f32
    %129 = vector.broadcast %cst_22 : f32 to vector<32x128xf32>
    %130 = arith.maximumf %128, %129 : vector<32x128xf32>
    %131 = vector.extract_strided_slice %111 {offsets = [0, 2], sizes = [32, 1], strides = [1, 1]} : vector<32x6xf32> to vector<32x1xf32>
    %132 = vector.extract_strided_slice %111 {offsets = [0, 3], sizes = [32, 1], strides = [1, 1]} : vector<32x6xf32> to vector<32x1xf32>
    %133 = arith.mulf %131, %131 : vector<32x1xf32>
    %134 = arith.subf %132, %133 : vector<32x1xf32>
    %135 = vector.broadcast %131 : vector<32x1xf32> to vector<32x128xf32>
    %136 = arith.subf %59, %135 : vector<32x128xf32>
    %cst_23 = arith.constant 9.99999974E-6 : f32
    %137 = vector.broadcast %cst_23 : f32 to vector<32x1xf32>
    %138 = arith.addf %134, %137 : vector<32x1xf32>
    %139 = math.rsqrt %138 : vector<32x1xf32>
    %140 = vector.broadcast %139 : vector<32x1xf32> to vector<32x128xf32>
    %141 = arith.mulf %136, %140 : vector<32x128xf32>
    %142 = vector.extract_strided_slice %6 {offsets = [0, 1], sizes = [32, 1], strides = [1, 1]} : vector<32x10xf32> to vector<32x1xf32>
    %143 = vector.broadcast %142 : vector<32x1xf32> to vector<32x128xf32>
    %144 = arith.mulf %141, %143 : vector<32x128xf32>
    %145 = vector.extract_strided_slice %6 {offsets = [0, 4], sizes = [32, 1], strides = [1, 1]} : vector<32x10xf32> to vector<32x1xf32>
    %146 = vector.broadcast %145 : vector<32x1xf32> to vector<32x128xf32>
    %147 = arith.addf %144, %146 : vector<32x128xf32>
    %cst_24 = arith.constant 0.000000e+00 : f32
    %148 = vector.broadcast %cst_24 : f32 to vector<32x128xf32>
    %149 = arith.maximumf %147, %148 : vector<32x128xf32>
    %150 = vector.extract_strided_slice %111 {offsets = [0, 4], sizes = [32, 1], strides = [1, 1]} : vector<32x6xf32> to vector<32x1xf32>
    %151 = vector.extract_strided_slice %111 {offsets = [0, 5], sizes = [32, 1], strides = [1, 1]} : vector<32x6xf32> to vector<32x1xf32>
    %152 = arith.mulf %150, %150 : vector<32x1xf32>
    %153 = arith.subf %151, %152 : vector<32x1xf32>
    %154 = vector.broadcast %150 : vector<32x1xf32> to vector<32x128xf32>
    %155 = arith.subf %94, %154 : vector<32x128xf32>
    %cst_25 = arith.constant 9.99999974E-6 : f32
    %156 = vector.broadcast %cst_25 : f32 to vector<32x1xf32>
    %157 = arith.addf %153, %156 : vector<32x1xf32>
    %158 = math.rsqrt %157 : vector<32x1xf32>
    %159 = vector.broadcast %158 : vector<32x1xf32> to vector<32x128xf32>
    %160 = arith.mulf %155, %159 : vector<32x128xf32>
    %161 = vector.extract_strided_slice %6 {offsets = [0, 2], sizes = [32, 1], strides = [1, 1]} : vector<32x10xf32> to vector<32x1xf32>
    %162 = vector.broadcast %161 : vector<32x1xf32> to vector<32x128xf32>
    %163 = arith.mulf %160, %162 : vector<32x128xf32>
    %164 = vector.extract_strided_slice %6 {offsets = [0, 5], sizes = [32, 1], strides = [1, 1]} : vector<32x10xf32> to vector<32x1xf32>
    %165 = vector.broadcast %164 : vector<32x1xf32> to vector<32x128xf32>
    %166 = arith.addf %163, %165 : vector<32x128xf32>
    %cst_26 = arith.constant 0.000000e+00 : f32
    %167 = vector.broadcast %cst_26 : f32 to vector<32x128xf32>
    %168 = arith.maximumf %166, %167 : vector<32x128xf32>
    %169 = tpu.concatenate %130, %149, %168, %10 in 0 : vector<32x128xf32>, vector<32x128xf32>, vector<32x128xf32>, vector<16x128xf32> -> vector<112x128xf32>
    %cst_27 = arith.constant dense<0.000000e+00> : vector<32x128xf32>
    %170 = tpu.matmul %4, %169, %cst_27 {dimension_numbers = #tpu.dot_dimension_numbers<[1], [0], [0], [1], [0, 0, 1, 1], [], []>} : vector<32x112xf32>, vector<112x128xf32>, vector<32x128xf32> -> vector<32x128xf32>
    %171 = vector.extract_strided_slice %6 {offsets = [0, 9], sizes = [32, 1], strides = [1, 1]} : vector<32x10xf32> to vector<32x1xf32>
    %172 = vector.broadcast %171 : vector<32x1xf32> to vector<32x128xf32>
    %173 = arith.addf %170, %172 : vector<32x128xf32>
    %c0_28 = arith.constant 0 : index
    %c0_29 = arith.constant 0 : index
    %c0_30 = arith.constant 0 : index
    %174 = vector.load %arg7[%c0_28, %c0_29, %c0_30] : memref<1x32x128xf32, #tpu.memory_space<vmem>>, vector<1x32x128xf32>
    %175 = vector.shape_cast %174 : vector<1x32x128xf32> to vector<32x128xf32>
    %176 = vector.shape_cast %173 : vector<32x128xf32> to vector<1x32x128xf32>
    tpu.vector_store %arg7[%c0_28, %c0_29, %c0_30], %176 {strides = array<i32>} : memref<1x32x128xf32, #tpu.memory_space<vmem>>, vector<1x32x128xf32>,
    return
  }
  func.func @transform_0(%arg0: i32) -> (i32, i32, i32) {
    %c0_i32 = arith.constant 0 : i32
    %c0_i32_0 = arith.constant 0 : i32
    %c0_i32_1 = arith.constant 0 : i32
    return %arg0, %c0_i32, %c0_i32_0 : i32, i32, i32
  }
  func.func @transform_1(%arg0: i32) -> (i32, i32) {
    %c0_i32 = arith.constant 0 : i32
    %c0_i32_0 = arith.constant 0 : i32
    %c0_i32_1 = arith.constant 0 : i32
    return %c0_i32, %c0_i32_0 : i32, i32
  }
  func.func @transform_2(%arg0: i32) -> (i32, i32) {
    %c0_i32 = arith.constant 0 : i32
    %c0_i32_0 = arith.constant 0 : i32
    %c0_i32_1 = arith.constant 0 : i32
    return %c0_i32, %c0_i32_0 : i32, i32
  }
  func.func @transform_3(%arg0: i32) -> (i32, i32) {
    %c0_i32 = arith.constant 0 : i32
    %c0_i32_0 = arith.constant 0 : i32
    %c0_i32_1 = arith.constant 0 : i32
    return %c0_i32, %c0_i32_0 : i32, i32
  }
  func.func @transform_4(%arg0: i32) -> (i32, i32) {
    %c0_i32 = arith.constant 0 : i32
    %c0_i32_0 = arith.constant 0 : i32
    %c0_i32_1 = arith.constant 0 : i32
    return %c0_i32, %c0_i32_0 : i32, i32
  }
  func.func @transform_5(%arg0: i32) -> (i32, i32) {
    %c0_i32 = arith.constant 0 : i32
    %c0_i32_0 = arith.constant 0 : i32
    %c0_i32_1 = arith.constant 0 : i32
    return %c0_i32, %c0_i32_0 : i32, i32
  }
  func.func @transform_6(%arg0: i32) -> (i32, i32, i32) {
    %c0_i32 = arith.constant 0 : i32
    %c0_i32_0 = arith.constant 0 : i32
    %c0_i32_1 = arith.constant 0 : i32
    return %arg0, %c0_i32, %c0_i32_0 : i32, i32, i32
  }
}

</mosaic_0001>

<bundles_post_ra>
// kernel: tpu_custom_call.1
= control target key start
LH: loop header
LB: loop body
LE: loop exit
PB: predicated region body
PF: predicated region fallthrough
CT: control target
= control target key end

     0   :  { %11 = vsyncpa [#allocation3], 0  ;;  %s2672_s0 = inlined_call_operand.vmem [shape: f32[2,16,256], index: 0, kind: input, shape index: {}]   ;;  %s2673_s1 = inlined_call_operand.vmem [shape: f32[16,18], index: 1, kind: input, shape index: {}]   ;;  %s2674_s2 = inlined_call_operand.vmem [shape: f32[96,16], index: 2, kind: input, shape index: {}]   ;;  %s2675_s3 = inlined_call_operand.vmem [shape: f32[32,112], index: 3, kind: input, shape index: {}]   ;;  %s2676_s4 = inlined_call_operand.vmem [shape: f32[32,32], index: 4, kind: input, shape index: {}]   ;;  %s2677_s5 = inlined_call_operand.vmem [shape: f32[32,10], index: 5, kind: input, shape index: {}]   ;;  %s2678_s6 = inlined_call_operand.hbm [shape: f32[2,32,128], index: 6, kind: output, shape index: {}]  }
   0x1   :  { %13 = vsyncpa [#allocation3 + $0x1], 0  ;;  %s1948_s21 = smov 0   ;;  %s1950_s22 = smov 0  }
   0x2   :  { %s1952_s23 = smov 0   ;;  %s1954_s24 = smov 0  }
   0x3 LB: > { %s1969_s25 = sadd.s32 4294967295, %s1884_s24   ;;  %s1559_s26 = sadd.s32 4294967294, %s1884_s24   ;;  %s1884_s24 = sphi %s1954_s24, %s2688_s24   ;;  %s1880_s23 = sphi %s1952_s23, %s2687_s23   ;;  %s1876_s22 = sphi %s1950_s22, %s2686_s22   ;;  %s1872_s21 = sphi %s1948_s21, %s2685_s21  }
   0x4   : > { %s1973_s27 = sadd.s32 1, %s1884_s24   ;;  %s157_s28 = sadd.s32 1, %s1880_s23 }
   0x5   : > { %s154_s29 = ssub.s32 %s1884_s24, %s1973_s27  ;;  %p167_p0 = scmp.ne.s32.totalorder %s1880_s23, %s1876_s22 }
   0x6   : > { %p155_p1 = scmp.eq.s32.totalorder %s154_s29, 0  ;;  %p168_p2 = scmp.eq.s32.totalorder %s1969_s25, 1 }
   0x7   : > { %p173_p3 = scmp.ne.s32.totalorder %s1876_s22, %s1872_s21  ;;  %p174_p4 = scmp.eq.s32.totalorder %s1559_s26, 1 }
   0x8   : > { %s1984_s30 = scalar_select %p155_p1, %s1880_s23, %s157_s28  }
   0x9   : > { %p1986_p5 = por %p168_p2, %p167_p0  ;;  %p1990_p6 = por %p174_p4, %p173_p3 }
   0xa   : > { %p1562_p7 = scmp.ge.s32.totalorder %s1884_s24, 1  ;;  %p215_p8 = scmp.lt.s32.totalorder %s1884_s24, 3 }
   0xc   : > { %p216_p9 = pnand %p1562_p7, %p215_p8 }
   0xe   : > { %219 = sbr.rel (%p216_p9) target bundleno = 1364 (0x554), region = 44 }
  0x13   : > { %v1999_v0 = vld [vmem:[%s2673_s1] sm:$0xff]  ;;  %v1886_v1 = vmov 1   ;;  %v1887_v2 = vmov 0   ;;  %v1888_v3 = vmov 2   ;;  %v2010_v4 = vld [vmem:[%s2673_s1 + $0x8] sm:$0xff]  ;;  %v1889_v6 = vmov 6  }
  0x14   : > { %1702 = vset.pattern.permute.xlu1 %v1886_v1  ;;  %1701 = vset.pattern.permute.xlu0 %v1887_v2  ;;  %v2017_v5 = vld [vmem:[%s2677_s5] sm:$0xff]  ;;  %v1890_v7 = vmov 15   ;;  %v2024_v8 = vld [vmem:[%s2677_s5 + $0x10] sm:$0xff]  ;;  %v2032_v9 = vld [vmem:[%s2677_s5 + $0x8] sm:$0xff]  ;;  %v1891_v10 = vmov 3   ;;  %v1892_v11 = vmov 4  }
  0x15   : > { %295 = vperm.xlu1 %1702, %v1999_v0   ;;  %282 = vperm.xlu0 %1701, %v1999_v0   ;;  %v1893_v12 = vmov 5   ;;  %v2047_v13 = vld [vmem:[%s2677_s5 + $0x18] sm:$0xff]  ;;  %v1894_v14 = vmov 7   ;;  %v1895_v15 = vmov 10   ;;  %v1896_v16 = vmov 9   ;;  %p245_p10 = scmp.lt.s32.totalorder %s1969_s25, 1 }
  0x16   : > { %1703 = vset.pattern.permute.xlu2 %v1888_v3  ;;  %v1897_v17 = vmov 12   ;;  %v1898_v18 = vmov 11   ;;  %v1899_v19 = vmov 13   ;;  %s1900_s11 = smov 126   ;;  %s1901_s12 = smov 124   ;;  %v1902_v44 = vmov 14  }
  0x17   : > { %330 = vperm.xlu2 %1703, %v1999_v0   ;;  %s246_s26 = scalar_select %p245_p10, %s1969_s25, 1  ;;  %v1904_v55 = vmov 16   ;;  %vm318_vm0 = vcmask 1031168   ;;  %vm353_vm1 = vcmask 1014784   ;;  %vm558_vm2 = vcmask 998400  }
  0x18   : > { %s1903_s13 = smov 122   ;;  %s1906_s14 = smov 120   ;;  %vm593_vm3 = vcmask 982016   ;;  %vm412_vm4 = vcmask 130048   ;;  %vm843_vm5 = vcmask 965632   ;;  %vm874_vm6 = vcmask 949248  }
  0x19   : > { %s1591_s28 = sshll.u32 %s246_s26, 5  ;;  %s1908_s15 = smov 118   ;;  %vm1008_vm7 = vcmask 7168   ;;  %vm1013_vm8 = vcmask 15360   ;;  %vm1018_vm9 = vcmask 23552   ;;  %vm1023_vm10 = vcmask 31744  }
  0x1a   : > { %s2075_s10 = scalar_lea.vmem %s2672_s0, %s1591_s28  ;;  %s1909_s16 = smov 116   ;;  %vm1028_vm11 = vcmask 39936   ;;  %vm1033_vm12 = vcmask 261120  }
  0x1b   : > { %v2080_v22 = vld [vmem:[%s2075_s10] sm:$0xff]  ;;  %v2087_v26 = vld [vmem:[%s2075_s10 + $0x10] sm:$0xff]  ;;  %v2090_v27 = vld [vmem:[%s2075_s10 + $0x18] sm:$0xff]  ;;  %s1842_s29 = scalar_lea.hbm %s2678_s6, 64 }
  0x1c   : > { %v2095_v29 = vld [vmem:[%s2075_s10 + $0x8] sm:$0xff] }
  0x1d   : > { %299 = vperm.xlu1 %1702, %v2010_v4   ;;  %287 = vperm.xlu0 %1701, %v2010_v4  }
  0x1f   : > { %1707 = vset.pattern.permute.xlu2 %v1889_v6 }
  0x20   : > { %378 = vperm.xlu2 %1707, %v2017_v5  }
  0x25   : > { %1706 = vset.pattern.permute.xlu1 %v1890_v7  ;;  %1704 = vset.pattern.permute.xlu0 %v1888_v3 }
  0x26   : > { %369 = vperm.xlu1 %1706, %v2010_v4   ;;  %334 = vperm.xlu0 %1704, %v2010_v4  }
  0x28   : > { %388 = vperm.xlu2 %1707, %v2024_v8  }
  0x2e   : > { %1708 = vset.pattern.permute.xlu1 %v1889_v6  ;;  %1705 = vset.pattern.permute.xlu0 %v1890_v7  ;;  %v1905_v7 = vmov 8  }
  0x2f   : > { %383 = vperm.xlu1 %1708, %v2032_v9   ;;  %365 = vperm.xlu0 %1705, %v1999_v0  }
  0x30   : > { %1710 = vset.pattern.permute.xlu2 %v1891_v10 }
  0x31   : > { %459 = vperm.xlu2 %1710, %v2010_v4  }
  0x37   : > { %1709 = vset.pattern.permute.xlu1 %v1891_v10  ;;  %1711 = vset.pattern.permute.xlu0 %v1892_v11 }
  0x38   : > { %455 = vperm.xlu1 %1709, %v1999_v0   ;;  %471 = vperm.xlu0 %1711, %v2010_v4  }
  0x39   : > { %1714 = vset.pattern.permute.xlu2 %v1893_v12 }
  0x3a   : > { %505 = vperm.xlu2 %1714, %v2010_v4  }
  0x40   : > { %1713 = vset.pattern.permute.xlu1 %v1892_v11  ;;  %1712 = vset.pattern.permute.xlu0 %v1889_v6 }
  0x41   : > { %467 = vperm.xlu1 %1713, %v1999_v0   ;;  %393 = vperm.xlu0 %1712, %v2047_v13  }
  0x42   : > { %1716 = vset.pattern.permute.xlu2 %v1889_v6 }
  0x43   : > { %539 = vperm.xlu2 %1716, %v2010_v4  }
  0x49   : > { %535 = vperm.xlu0 %1712, %v1999_v0   ;;  %1715 = vset.pattern.permute.xlu1 %v1893_v12 }
  0x4a   : > { %501 = vperm.xlu1 %1715, %v1999_v0  }
  0x4b   : > { %1718 = vset.pattern.permute.xlu2 %v1894_v14 }
  0x4c   : > { %570 = vperm.xlu2 %1718, %v1999_v0  }
  0x51   : > { %1721 = vset.pattern.permute.xlu0 %v1895_v15 }
  0x52   : > { %1717 = vset.pattern.permute.xlu1 %v1894_v14  ;;  %734 = vperm.xlu0 %1721, %v2010_v4  }
  0x53   : > { %574 = vperm.xlu1 %1717, %v2010_v4  }
  0x54   : > { %1720 = vset.pattern.permute.xlu2 %v1896_v16 }
  0x55   : > { %700 = vperm.xlu2 %1720, %v1999_v0  }
  0x5a   : > { %1726 = vset.pattern.permute.xlu0 %v1897_v17 }
  0x5b   : > { %1719 = vset.pattern.permute.xlu1 %v1896_v16 }
  0x5c   : > { %704 = vperm.xlu1 %1719, %v2010_v4  }
  0x5d   : > { %1723 = vset.pattern.permute.xlu2 %v1898_v18 }
  0x5e   : > { %764 = vperm.xlu2 %1723, %v2010_v4  }
  0x64   : > { %1722 = vset.pattern.permute.xlu1 %v1895_v15 }
  0x65   : > { %730 = vperm.xlu1 %1722, %v1999_v0  }
  0x66   : > { %1725 = vset.pattern.permute.xlu2 %v1897_v17 }
  0x67   : > { %794 = vperm.xlu2 %1725, %v2010_v4  }
  0x6d   : > { %1724 = vset.pattern.permute.xlu1 %v1898_v18 }
  0x6e   : > { %760 = vperm.xlu1 %1724, %v1999_v0  }
  0x6f   : > { %1728 = vset.pattern.permute.xlu2 %v1899_v19 }
  0x71   : > { %v331_v20 = vpop.permute.xlu2 %330 }
  0x72   : > { %v337_v35 = vmul.f32 %v331_v20, %v2080_v22  ;;  %v338_v36 = vmul.f32 %v331_v20, %v2095_v29 }
  0x76   : > { %1727 = vset.pattern.permute.xlu1 %v1899_v19 }
  0x77   : > { %824 = vperm.xlu1 %1727, %v2010_v4  }
  0x7a   : > { %v2077_v21 = vpop.permute.xlu2 %378 }
  0x7f   : > { %1732 = vset.pattern.permute.xlu1 %v1905_v7 }
  0x82   : > { %v2092_v28 = vpop.permute.xlu2 %388 }
  0x87   : > { %v296_v23 = vpop.permute.xlu1 %295  ;;  %v2082_v24 = vpop.permute.xlu0 %282 }
  0x88   : > { %v302_v25 = vmul.f32 %v296_v23, %v2080_v22  ;;  %v303_v34 = vmul.f32 %v296_v23, %v2095_v29 }
  0x8a   : > { %310 = vrot.lane.b32.xlu2 %v302_v25, %s1900_s11 }
  0x8b   : > { %v2107_v37 = vpop.permute.xlu2 %459 }
  0x8f   : > { %v300_v30 = vpop.permute.xlu1 %299  ;;  %v2099_v33 = vpop.permute.xlu0 %287 }
  0x90   : > { %v304_v31 = vmul.f32 %v300_v30, %v2087_v26  ;;  %v305_v32 = vmul.f32 %v300_v30, %v2090_v27 }
  0x92   : > { %316 = vrot.lane.b32.xlu1 %v305_v32, %s1900_s11  ;;  %314 = vrot.lane.b32.xlu0 %v304_v31, %s1900_s11 }
  0x93   : > { %312 = vrot.lane.b32.xlu2 %v303_v34, %s1900_s11 }
  0x94   : > { %v506_v45 = vpop.permute.xlu2 %505 }
  0x95   : > { %v510_v56 = vmul.f32 %v506_v45, %v2087_v26  ;;  %v511_v6 = vmul.f32 %v506_v45, %v2090_v27 }
  0x98   : > { %v2109_v38 = vpop.permute.xlu1 %369  ;;  %v335_v39 = vpop.permute.xlu0 %334 }
  0x99   : > { %v339_v40 = vmul.f32 %v335_v39, %v2087_v26  ;;  %v340_v41 = vmul.f32 %v335_v39, %v2090_v27 }
  0x9a   : > { %790 = vperm.xlu0 %1726, %v1999_v0   ;;  %345 = vrot.lane.b32.xlu1 %v337_v35, %s1901_s12 }
  0x9b   : > { %347 = vrot.lane.b32.xlu2 %v338_v36, %s1901_s12 }
  0x9d   : > { %v540_v50 = vpop.permute.xlu2 %539 }
  0x9e   : > { %v544_v51 = vmul.f32 %v540_v50, %v2087_v26  ;;  %v545_v18 = vmul.f32 %v540_v50, %v2090_v27 }
  0xa1   : > { %v2116_v42 = vpop.permute.xlu1 %383  ;;  %v2118_v43 = vpop.permute.xlu0 %365 }
  0xa2   : > { %349 = vrot.lane.b32.xlu1 %v339_v40, %s1901_s12  ;;  %1729 = vset.pattern.permute.xlu0 %v1902_v44 }
  0xa3   : > { %351 = vrot.lane.b32.xlu2 %v340_v41, %s1901_s12  ;;  %855 = vperm.xlu0 %1729, %v2010_v4  }
  0xa6   : > { %v571_v60 = vpop.permute.xlu2 %570 }
  0xa7   : > { %v577_v63 = vmul.f32 %v571_v60, %v2080_v22  ;;  %v578_v39 = vmul.f32 %v571_v60, %v2095_v29 }
  0xaa   : > { %v2123_v46 = vpop.permute.xlu1 %455  ;;  %v472_v47 = vpop.permute.xlu0 %471 }
  0xab   : > { %v476_v48 = vmul.f32 %v472_v47, %v2087_v26  ;;  %v477_v49 = vmul.f32 %v472_v47, %v2090_v27  ;;  %851 = vperm.xlu0 %1729, %v1999_v0  }
  0xad   : > { %488 = vrot.lane.b32.xlu1 %v477_v49, %s1900_s11  ;;  %486 = vrot.lane.b32.xlu2 %v476_v48, %s1900_s11 }
  0xaf   : > { %v701_v15 = vpop.permute.xlu2 %700 }
  0xb0   : > { %v707_v23 = vmul.f32 %v701_v15, %v2080_v22 }
  0xb3   : > { %v468_v52 = vpop.permute.xlu1 %467  ;;  %v2131_v53 = vpop.permute.xlu0 %393  ;;  %554 = vrot.lane.b32.xlu0 %v544_v51, %s1903_s13  ;;  %v708_v51 = vmul.f32 %v701_v15, %v2095_v29 }
  0xb4   : > { %v474_v54 = vmul.f32 %v468_v52, %v2080_v22  ;;  %1731 = vset.pattern.permute.xlu0 %v1904_v55  ;;  %v475_v57 = vmul.f32 %v468_v52, %v2095_v29 }
  0xb5   : > { %820 = vperm.xlu2 %1728, %v1999_v0  }
  0xb6   : > { %482 = vrot.lane.b32.xlu1 %v474_v54, %s1900_s11 }
  0xb8   : > { %v765_v20 = vpop.permute.xlu2 %764 }
  0xb9   : > { %v769_v41 = vmul.f32 %v765_v20, %v2087_v26 }
  0xbb   : > { %v536_v58 = vpop.permute.xlu0 %535 }
  0xbc   : > { %v543_v59 = vmul.f32 %v536_v58, %v2095_v29  ;;  %v502_v61 = vpop.permute.xlu1 %501  ;;  %v542_v30 = vmul.f32 %v536_v58, %v2080_v22 }
  0xbd   : > { %484 = vrot.lane.b32.xlu2 %v475_v57, %s1900_s11  ;;  %v508_v62 = vmul.f32 %v502_v61, %v2080_v22  ;;  %v509_v17 = vmul.f32 %v502_v61, %v2095_v29 }
  0xbe   : > { %552 = vrot.lane.b32.xlu0 %v543_v59, %s1903_s13  ;;  %520 = vrot.lane.b32.xlu1 %v510_v56, %s1901_s12  ;;  %v770_v59 = vmul.f32 %v765_v20, %v2090_v27 }
  0xbf   : > { %1730 = vset.pattern.permute.xlu2 %v1904_v55 }
  0xc1   : > { %v795_v34 = vpop.permute.xlu2 %794 }
  0xc4   : > { %v735_v32 = vpop.permute.xlu0 %734 }
  0xc5   : > { %522 = vrot.lane.b32.xlu2 %v511_v6, %s1901_s12  ;;  %v575_v19 = vpop.permute.xlu1 %574  ;;  %v740_v35 = vmul.f32 %v735_v32, %v2090_v27  ;;  %v739_v54 = vmul.f32 %v735_v32, %v2087_v26  ;;  %v799_v6 = vmul.f32 %v795_v34, %v2087_v26 }
  0xc6   : > { %516 = vrot.lane.b32.xlu1 %v508_v62, %s1901_s12  ;;  %585 = vrot.lane.b32.xlu0 %v577_v63, %s1906_s14  ;;  %v579_v25 = vmul.f32 %v575_v19, %v2087_v26  ;;  %v580_v36 = vmul.f32 %v575_v19, %v2090_v27 }
  0xcd   : > { %518 = vrot.lane.b32.xlu2 %v509_v17, %s1901_s12 }
  0xce   : > { %556 = vrot.lane.b32.xlu1 %v545_v18, %s1903_s13  ;;  %605 = vperm.xlu0 %1731, %v1999_v0   ;;  %v705_v31 = vpop.permute.xlu1 %704 }
  0xcf   : > { %v709_v47 = vmul.f32 %v705_v31, %v2087_v26  ;;  %v710_v49 = vmul.f32 %v705_v31, %v2090_v27 }
  0xd5   : > { %550 = vrot.lane.b32.xlu2 %v542_v30, %s1903_s13 }
  0xd6   : > { %589 = vrot.lane.b32.xlu1 %v579_v25, %s1906_s14  ;;  %715 = vrot.lane.b32.xlu0 %v707_v23, %s1900_s11  ;;  %v800_v23 = vmul.f32 %v795_v34, %v2090_v27  ;;  %v1907_v25 = vmov 17   ;;  %v290_v34 = vmul.f32 %v2082_v24, %v2080_v22 }
  0xd7   : > { %1757 = vset.pattern.permute.xlu0 %v1894_v14  ;;  %v731_v40 = vpop.permute.xlu1 %730 }
  0xd8   : > { %v737_v56 = vmul.f32 %v731_v40, %v2080_v22  ;;  %v738_v58 = vmul.f32 %v731_v40, %v2095_v29  ;;  %v291_v40 = vmul.f32 %v2082_v24, %v2095_v29  ;;  %v293_v24 = vmul.f32 %v2099_v33, %v2090_v27 }
  0xdd   : > { %591 = vrot.lane.b32.xlu2 %v580_v36, %s1906_s14 }
  0xde   : > { %587 = vrot.lane.b32.xlu1 %v578_v39, %s1906_s14  ;;  %751 = vrot.lane.b32.xlu0 %v740_v35, %s1901_s12 }
  0xe0   : > { %v761_v45 = vpop.permute.xlu1 %760 }
  0xe1   : > { %v768_v48 = vmul.f32 %v761_v45, %v2095_v29  ;;  %v767_v63 = vmul.f32 %v761_v45, %v2080_v22 }
  0xe4   : > { %v311_v44 = vpop.permute.xlu2 %310 }
  0xe5   : > { %609 = vperm.xlu2 %1730, %v2010_v4  }
  0xe6   : > { %694 = vperm.xlu1 %1732, %v2010_v4   ;;  %779 = vrot.lane.b32.xlu0 %v769_v41, %s1903_s13 }
  0xe9   : > { %v825_v55 = vpop.permute.xlu1 %824 }
  0xea   : > { %v830_v30 = vmul.f32 %v825_v55, %v2090_v27 }
  0xed   : > { %v313_v50 = vpop.permute.xlu2 %312  ;;  %719 = vrot.lane.b32.xlu2 %v709_v47, %s1900_s11 }
  0xee   : > { %721 = vrot.lane.b32.xlu1 %v710_v49, %s1900_s11  ;;  %1733 = vset.pattern.permute.xlu2 %v1905_v7  ;;  %v319_v31 = vsel %vm318_vm0, %v311_v44, %v313_v50  ;;  %v829_v44 = vmul.f32 %v825_v55, %v2087_v26 }
  0xef   : > { %777 = vrot.lane.b32.xlu0 %v768_v48, %s1903_s13  ;;  %1744 = vset.pattern.permute.xlu1 %v1907_v25  ;;  %v325_v41 = vadd.f32 %v319_v31, %v290_v34  ;;  %v326_v48 = vadd.f32 %v313_v50, %v291_v40 }
  0xf5   : > { %v348_v52 = vpop.permute.xlu2 %347  ;;  %690 = vperm.xlu2 %1733, %v1999_v0  }
  0xf6   : > { %717 = vrot.lane.b32.xlu1 %v708_v51, %s1900_s11  ;;  %v361_v51 = vadd.f32 %v348_v52, %v326_v48  ;;  %v464_v48 = vmul.f32 %v2107_v37, %v2087_v26 }
  0xfd   : > { %749 = vrot.lane.b32.xlu2 %v739_v54, %s1901_s12  ;;  %v352_v57 = vpop.permute.xlu2 %351 }
  0xfe   : > { %745 = vrot.lane.b32.xlu1 %v737_v56, %s1901_s12  ;;  %1745 = vset.pattern.permute.xlu2 %v1907_v25  ;;  %v292_v56 = vmul.f32 %v2099_v33, %v2087_v26 }
 0x104   : > { %v317_v60 = vpop.permute.xlu1 %316  ;;  %v315_v61 = vpop.permute.xlu0 %314 }
 0x105   : > { %747 = vrot.lane.b32.xlu2 %v738_v58, %s1901_s12  ;;  %v320_v54 = vsel %vm318_vm0, %v315_v61, %v317_v60 }
 0x106   : > { %781 = vrot.lane.b32.xlu1 %v770_v59, %s1903_s13 }
 0x107   : > { %v2190_v62 = vpop.permute.xlu2 %486 }
 0x10c   : > { %v791_v15 = vpop.permute.xlu0 %790  ;;  %v346_v18 = vpop.permute.xlu1 %345 }
 0x10d   : > { %v797_v17 = vmul.f32 %v791_v15, %v2080_v22  ;;  %775 = vrot.lane.b32.xlu2 %v767_v63, %s1903_s13  ;;  %v798_v20 = vmul.f32 %v791_v15, %v2095_v29  ;;  %v354_v39 = vsel %vm353_vm1, %v346_v18, %v348_v52  ;;  %v328_v63 = vadd.f32 %v317_v60, %v293_v24 }
 0x10e   : > { %809 = vrot.lane.b32.xlu1 %v799_v6, %s1906_s14  ;;  %v360_v49 = vadd.f32 %v354_v39, %v325_v41  ;;  %v327_v52 = vadd.f32 %v320_v54, %v292_v56  ;;  %v373_v6 = vadd.f32 %v2118_v43, %v361_v51 }
 0x10f   : > { %805 = vrot.lane.b32.xlu0 %v797_v17, %s1906_s14  ;;  %v821_v19 = vpop.permute.xlu2 %820  ;;  %v363_v33 = vadd.f32 %v352_v57, %v328_v63  ;;  %v463_v63 = vmul.f32 %v2123_v46, %v2095_v29 }
 0x110   : > { %v827_v45 = vmul.f32 %v821_v19, %v2080_v22  ;;  %v372_v50 = vadd.f32 %v2118_v43, %v360_v49  ;;  %v828_v61 = vmul.f32 %v821_v19, %v2095_v29 }
 0x114   : > { %v350_v32 = vpop.permute.xlu1 %349 }
 0x115   : > { %811 = vrot.lane.b32.xlu2 %v800_v23, %s1906_s14  ;;  %v856_v36 = vpop.permute.xlu0 %855  ;;  %v355_v59 = vsel %vm353_vm1, %v350_v32, %v352_v57 }
 0x116   : > { %807 = vrot.lane.b32.xlu1 %v798_v20, %s1906_s14  ;;  %v860_v47 = vmul.f32 %v856_v36, %v2087_v26  ;;  %v362_v17 = vadd.f32 %v355_v59, %v327_v52  ;;  %v1734_v20 = vpack.i.bf16 %v373_v6, %v372_v50  ;;  %v861_v19 = vmul.f32 %v856_v36, %v2090_v27 }
 0x117   : > { %841 = vrot.lane.b32.xlu0 %v830_v30, %s1908_s15  ;;  %v2205_v35 = vpop.permute.xlu2 %484  ;;  %v375_v30 = vadd.f32 %v2109_v38, %v363_v33 }
 0x118   : > { %v374_v23 = vadd.f32 %v2109_v38, %v362_v17  ;;  %v465_v38 = vmul.f32 %v2107_v37, %v2090_v27  ;;  %v462_v37 = vmul.f32 %v2123_v46, %v2080_v22 }
 0x11a   : > { %v1739_v43 = vpack.i.bf16 %v375_v30, %v374_v23 }
 0x11d   : > { %839 = vrot.lane.b32.xlu2 %v829_v44, %s1908_s15  ;;  %v852_v15 = vpop.permute.xlu0 %851 }
 0x11e   : > { %835 = vrot.lane.b32.xlu1 %v827_v45, %s1908_s15  ;;  %v859_v18 = vmul.f32 %v852_v15, %v2095_v29  ;;  %v858_v34 = vmul.f32 %v852_v15, %v2080_v22  ;;  %v497_v15 = vadd.f32 %v2205_v35, %v463_v63 }
 0x11f   : > { %870 = vrot.lane.b32.xlu0 %v860_v47, %s1909_s16  ;;  %v489_v55 = vpop.permute.xlu1 %488  ;;  %v523_v58 = vpop.permute.xlu2 %522 }
 0x120   : > { %v499_v36 = vadd.f32 %v489_v55, %v465_v38  ;;  %v491_v47 = vsel %vm318_vm0, %v2190_v62, %v489_v55 }
 0x121   : > { %v498_v54 = vadd.f32 %v491_v47, %v464_v48 }
 0x125   : > { %837 = vrot.lane.b32.xlu2 %v828_v61, %s1908_s15  ;;  %v555_v32 = vpop.permute.xlu0 %554 }
 0x126   : > { %1735 = vrot.lane.b32.xlu1 %v1734_v20, %s1901_s12 }
 0x127   : > { %868 = vrot.lane.b32.xlu0 %v859_v18, %s1909_s16  ;;  %v519_v25 = vpop.permute.xlu2 %518 }
 0x128   : > { %v483_v60 = vpop.permute.xlu1 %482  ;;  %v531_v23 = vadd.f32 %v519_v25, %v497_v15 }
 0x129   : > { %v490_v62 = vsel %vm318_vm0, %v483_v60, %v2205_v35 }
 0x12a   : > { %v496_v61 = vadd.f32 %v490_v62, %v462_v37 }
 0x12d   : > { %1740 = vrot.lane.b32.xlu2 %v1739_v43, %s1901_s12 }
 0x12e   : > { %872 = vrot.lane.b32.xlu1 %v861_v19, %s1909_s16 }
 0x12f   : > { %v551_v31 = vpop.permute.xlu2 %550 }
 0x130   : > { %v521_v57 = vpop.permute.xlu1 %520  ;;  %v553_v41 = vpop.permute.xlu0 %552 }
 0x131   : > { %v525_v51 = vsel %vm353_vm1, %v521_v57, %v523_v58  ;;  %v559_v30 = vsel %vm558_vm2, %v551_v31, %v553_v41  ;;  %v566_v19 = vadd.f32 %v553_v41, %v531_v23 }
 0x132   : > { %v532_v24 = vadd.f32 %v525_v51, %v498_v54 }
 0x135   : > { %866 = vrot.lane.b32.xlu2 %v858_v34, %s1909_s16 }
 0x136   : > { %886 = vperm.xlu1 %1744, %v2010_v4   ;;  %v533_v4 = vadd.f32 %v523_v58, %v499_v36 }
 0x137   : > { %v592_v39 = vpop.permute.xlu2 %591 }
 0x138   : > { %v517_v40 = vpop.permute.xlu1 %516  ;;  %v586_v49 = vpop.permute.xlu0 %585 }
 0x139   : > { %v524_v52 = vsel %vm353_vm1, %v517_v40, %v519_v25 }
 0x13a   : > { %v530_v17 = vadd.f32 %v524_v52, %v496_v61 }
 0x13d   : > { %882 = vperm.xlu2 %1745, %v1999_v0  }
 0x13e   : > { %1758 = vset.pattern.permute.xlu1 %v1905_v7 }
 0x13f   : > { %v610_v45 = vpop.permute.xlu2 %609 }
 0x140   : > { %v557_v44 = vpop.permute.xlu1 %556  ;;  %v606_v20 = vpop.permute.xlu0 %605 }
 0x141   : > { %v568_v56 = vadd.f32 %v557_v44, %v533_v4  ;;  %v560_v0 = vsel %vm558_vm2, %v555_v32, %v557_v44  ;;  %v565_v32 = vadd.f32 %v559_v30, %v530_v17 }
 0x142   : > { %v567_v50 = vadd.f32 %v560_v0, %v532_v24 }
 0x143   : > { %v603_v58 = vadd.f32 %v592_v39, %v568_v56 }
 0x145   : > { %1756 = vset.pattern.permute.xlu2 %v1894_v14  ;;  %v615_v18 = vadd.f32 %v610_v45, %v603_v58 }
 0x146   : > { %629 = vperm.xlu2 %1756, %v2047_v13  }
 0x147   : > { %v720_v55 = vpop.permute.xlu2 %719 }
 0x148   : > { %v590_v59 = vpop.permute.xlu1 %589  ;;  %v716_v38 = vpop.permute.xlu0 %715 }
 0x149   : > { %v595_v14 = vsel %vm593_vm3, %v590_v59, %v592_v39 }
 0x14a   : > { %v602_v6 = vadd.f32 %v595_v14, %v567_v50 }
 0x14c   : > { %v614_v33 = vadd.f32 %v610_v45, %v602_v6 }
 0x14e   : > { %v1746_v60 = vpack.i.bf16 %v615_v18, %v614_v33  ;;  %621 = vperm.xlu2 %1756, %v2032_v9  }
 0x14f   : > { %v691_v46 = vpop.permute.xlu2 %690 }
 0x150   : > { %v588_v43 = vpop.permute.xlu1 %587  ;;  %1747 = vrot.lane.b32.xlu0 %v1746_v60, %s1900_s11  ;;  %v752_v44 = vpop.permute.xlu0 %751  ;;  %v697_v0 = vmul.f32 %v691_v46, %v2080_v22 }
 0x151   : > { %v594_v57 = vsel %vm593_vm3, %v586_v49, %v588_v43  ;;  %v601_v34 = vadd.f32 %v588_v43, %v566_v19 }
 0x152   : > { %v600_v35 = vadd.f32 %v594_v57, %v565_v32 }
 0x153   : > { %v613_v39 = vadd.f32 %v606_v20, %v601_v34 }
 0x154   : > { %v612_v40 = vadd.f32 %v606_v20, %v600_v35 }
 0x156   : > { %v1751_v36 = vpack.i.bf16 %v613_v39, %v612_v40  ;;  %617 = vperm.xlu2 %1756, %v2017_v5  }
 0x157   : > { %v750_v25 = vpop.permute.xlu2 %749 }
 0x158   : > { %v695_v45 = vpop.permute.xlu1 %694  ;;  %1752 = vrot.lane.b32.xlu1 %v1751_v36, %s1900_s11  ;;  %625 = vperm.xlu0 %1757, %v2024_v8   ;;  %v754_v48 = vsel %vm353_vm1, %v750_v25, %v752_v44  ;;  %v780_v58 = vpop.permute.xlu0 %779  ;;  %v256_v36 = vld [vmem:[%s2674_s2] sm:$0xff]  ;;  %s242_s11 = sand.u32 1, %s1876_s22  }
 0x159   : > { %v698_v31 = vmul.f32 %v695_v45, %v2087_v26  ;;  %s1563_s12 = sshll.u32 %s242_s11, 5 }
 0x15a   : > { %s244_s16 = scalar_lea.vmem [#allocation2], %s1563_s12 }
 0x15b   : > { %s1494_s17 = sshll.u32 %s244_s16, 4  ;;  %s1495_s17 = int_to_ptr.vmem [resolvable:$true] %s1494_s17 }
 0x15e   : > { %1760 = vset.pattern.permute.xlu2 %v1887_v2 }
 0x15f   : > { %v748_v41 = vpop.permute.xlu2 %747 }
 0x160   : > { %v722_v47 = vpop.permute.xlu1 %721  ;;  %904 = vperm.xlu1 %1758, %v2047_v13   ;;  %1759 = vset.pattern.permute.xlu0 %v1905_v7 }
 0x161   : > { %v724_v4 = vsel %vm318_vm0, %v720_v55, %v722_v47  ;;  %896 = vperm.xlu0 %1759, %v2032_v9   ;;  %v778_v52 = vpop.permute.xlu0 %777 }
 0x162   : > { %v728_v49 = vadd.f32 %v724_v4, %v698_v31 }
 0x164   : > { %v758_v51 = vadd.f32 %v754_v48, %v728_v49  ;;  %v257_v48 = vld [vmem:[%s2674_s2 + $0x8] sm:$0xff] }
 0x167   : > { %v776_v54 = vpop.permute.xlu2 %775 }
 0x168   : > { %v718_v56 = vpop.permute.xlu1 %717  ;;  %900 = vperm.xlu1 %1758, %v2024_v8   ;;  %v783_v20 = vsel %vm558_vm2, %v776_v54, %v778_v52 }
 0x169   : > { %1762 = vset.pattern.permute.xlu0 %v1891_v10  ;;  %v723_v24 = vsel %vm318_vm0, %v716_v38, %v718_v56 }
 0x16a   : > { %v727_v7 = vadd.f32 %v723_v24, %v697_v0 }
 0x16f   : > { %v812_v62 = vpop.permute.xlu2 %811 }
 0x170   : > { %v746_v37 = vpop.permute.xlu1 %745  ;;  %892 = vperm.xlu1 %1758, %v2017_v5  }
 0x171   : > { %v753_v55 = vsel %vm353_vm1, %v746_v37, %v748_v41  ;;  %v258_v37 = vld [vmem:[%s2674_s2 + $0x10] sm:$0xff] }
 0x172   : > { %v757_v50 = vadd.f32 %v753_v55, %v727_v7 }
 0x174   : > { %v787_v19 = vadd.f32 %v783_v20, %v757_v50  ;;  %v264_v50 = vld [vmem:[%s2674_s2 + $0x40] sm:$0xff] }
 0x175   : > { %v260_v20 = vld [vmem:[%s2674_s2 + $0x20] sm:$0xff] }
 0x177   : > { %v840_v59 = vpop.permute.xlu2 %839 }
 0x178   : > { %v782_v63 = vpop.permute.xlu1 %781  ;;  %1761 = vset.pattern.permute.xlu1 %v1887_v2 }
 0x179   : > { %v784_v14 = vsel %vm558_vm2, %v780_v58, %v782_v63  ;;  %v259_v58 = vld [vmem:[%s2674_s2 + $0x18] sm:$0xff]  ;;  %v266_v63 = vld [vmem:[%s2674_s2 + $0x50] sm:$0xff] }
 0x17a   : > { %v788_v22 = vadd.f32 %v784_v14, %v758_v51 }
 0x17f   : > { %v838_v61 = vpop.permute.xlu2 %837 }
 0x180   : > { %v810_v6 = vpop.permute.xlu1 %809 }
 0x181   : > { %v814_v15 = vsel %vm593_vm3, %v810_v6, %v812_v62  ;;  %v806_v18 = vpop.permute.xlu0 %805 }
 0x182   : > { %v818_v17 = vadd.f32 %v814_v15, %v788_v22  ;;  %v267_v22 = vld [vmem:[%s2674_s2 + $0x58] sm:$0xff] }
 0x187   : > { %v1741_v33 = vpop.permute.xlu2 %1740 }
 0x188   : > { %v1743_v23 = vunpack.i.h.bf16 %v1741_v33  ;;  %v1742_v60 = vunpack.i.l.bf16 %v1741_v33  ;;  %v808_v30 = vpop.permute.xlu1 %807 }
 0x189   : > { %v813_v46 = vsel %vm593_vm3, %v806_v18, %v808_v30  ;;  %v842_v57 = vpop.permute.xlu0 %841  ;;  %v263_v30 = vld [vmem:[%s2674_s2 + $0x38] sm:$0xff] }
 0x18a   : > { %v817_v43 = vadd.f32 %v813_v46, %v787_v19  ;;  %v409_v32 = vsel %vm353_vm1, %v1742_v60, %v1743_v23  ;;  %v845_v44 = vsel %vm843_vm5, %v840_v59, %v842_v57  ;;  %v265_v59 = vld [vmem:[%s2674_s2 + $0x48] sm:$0xff]  ;;  %v262_v60 = vld [vmem:[%s2674_s2 + $0x30] sm:$0xff] }
 0x18b   : > { %439 = vmatpush.msra.mxu0 %v409_v32  ;;  %v849_v51 = vadd.f32 %v845_v44, %v818_v17  ;;  %v261_v23 = vld [vmem:[%s2674_s2 + $0x28] sm:$0xff] }
 0x18f   : > { %v867_v45 = vpop.permute.xlu2 %866 }
 0x190   : > { %v836_v34 = vpop.permute.xlu1 %835 }
 0x191   : > { %v871_v35 = vpop.permute.xlu0 %870  ;;  %v844_v47 = vsel %vm843_vm5, %v836_v34, %v838_v61 }
 0x192   : > { %v848_v54 = vadd.f32 %v844_v47, %v817_v43 }
 0x197   : > { %v883_v24 = vpop.permute.xlu2 %882 }
 0x198   : > { %v1736_v39 = vpop.permute.xlu1 %1735 }
 0x199   : > { %v1738_v40 = vunpack.i.h.bf16 %v1736_v39  ;;  %v1737_v38 = vunpack.i.l.bf16 %v1736_v39  ;;  %v869_v41 = vpop.permute.xlu0 %868 }
 0x19a   : > { %v875_v4 = vsel %vm874_vm6, %v867_v45, %v869_v41 }
 0x19b   : > { %v408_v25 = vsel %vm353_vm1, %v1737_v38, %v1738_v40  ;;  %v879_v56 = vadd.f32 %v875_v4, %v848_v54 }
 0x19c   : > { %440 = vmatpush.msra.mxu0 %v408_v25 }
 0x19d   : > { %1566 = vmatmul.msk.f32.vlgmr.msra.gmra.mxu0 %vm412_vm4, %v256_v36  ;;  %v889_v55 = vadd.f32 %v883_v24, %v879_v56 }
 0x1a0   : > { %v873_v31 = vpop.permute.xlu1 %872  ;;  %v630_v39 = vpop.permute.xlu2 %629 }
 0x1a1   : > { %v876_v49 = vsel %vm874_vm6, %v871_v35, %v873_v31 }
 0x1a2   : > { %v880_v0 = vadd.f32 %v876_v49, %v849_v51 }
 0x1a5   : > { %1567 = vmatmul.msk.f32.gmra.mxu0 %vm412_vm4, %v257_v48 }
 0x1a8   : > { %v887_v62 = vpop.permute.xlu1 %886  ;;  %v622_v45 = vpop.permute.xlu2 %621 }
 0x1a9   : > { %v890_v7 = vadd.f32 %v887_v62, %v880_v0 }
 0x1ab   : > { %933 = vmatpush.msra.mxu2 %v890_v7 }
 0x1ad   : > { %1568 = vmatmul.msk.f32.gmra.mxu0 %vm412_vm4, %v258_v37  ;;  %934 = vmatpush.msra.mxu2 %v889_v55 }
 0x1ae   : > { %1574 = vmatmul.msk.f32.vlgmr.msra.gmra.mxu2 %vm412_vm4, %v264_v50 }
 0x1b0   : > { %v618_v47 = vpop.permute.xlu2 %617 }
 0x1b5   : > { %1569 = vmatmul.msk.f32.gmra.mxu0 %vm412_vm4, %v259_v58 }
 0x1b6   : > { %1575 = vmatmul.msk.f32.gmra.mxu2 %vm412_vm4, %v265_v59 }
 0x1be   : > { %1576 = vmatmul.msk.f32.gmra.mxu2 %vm412_vm4, %v266_v63 }
 0x1c2   : > { %v1748_v52 = vpop.permute.xlu0 %1747 }
 0x1c3   : > { %v1750_v14 = vunpack.i.h.bf16 %v1748_v52  ;;  %v1749_v61 = vunpack.i.l.bf16 %v1748_v52 }
 0x1c5   : > { %v645_v6 = vsel %vm318_vm0, %v1749_v61, %v1750_v14 }
 0x1c6   : > { %674 = vmatpush.msra.mxu1 %v645_v6  ;;  %1577 = vmatmul.msk.f32.gmra.mxu2 %vm412_vm4, %v267_v22 }
 0x1ca   : > { %v1753_v15 = vpop.permute.xlu1 %1752  ;;  %v626_v32 = vpop.permute.xlu0 %625 }
 0x1cb   : > { %v1755_v17 = vunpack.i.h.bf16 %v1753_v15  ;;  %v1754_v18 = vunpack.i.l.bf16 %v1753_v15 }
 0x1cd   : > { %v644_v33 = vsel %vm318_vm0, %v1754_v18, %v1755_v17 }
 0x1ce   : > { %675 = vmatpush.msra.mxu1 %v644_v33 }
 0x1cf   : > { %1570 = vmatmul.msk.f32.vlgmr.msra.gmra.mxu1 %vm412_vm4, %v260_v20 }
 0x1d2   : > { %v905_v34 = vpop.permute.xlu1 %904 }
 0x1d3   : > { %v897_v35 = vpop.permute.xlu0 %896 }
 0x1d7   : > { %1571 = vmatmul.msk.f32.gmra.mxu1 %vm412_vm4, %v261_v23 }
 0x1da   : > { %v901_v36 = vpop.permute.xlu1 %900 }
 0x1df   : > { %1572 = vmatmul.msk.f32.gmra.mxu1 %vm412_vm4, %v262_v60 }
 0x1e2   : > { %v893_v61 = vpop.permute.xlu1 %892 }
 0x1e7   : > { %1573 = vmatmul.msk.f32.gmra.mxu1 %vm412_vm4, %v263_v30 }
 0x21a   : > { %v442_v19 = vpop.f32.mrf.mxu0 }
 0x21b   : > { %v2334_v46 = vadd.f32 %v442_v19, %v2077_v21 }
 0x21d   : > { %v956_v43 = vmul.f32 %v2334_v46, %v2334_v46 }
 0x21f   : > { %960 = vadd.xlane.f32.xlu2 %v956_v43 }
 0x222   : > { %v445_v51 = vpop.f32.mrf.mxu0 }
 0x223   : > { %v2355_v54 = vadd.f32 %v445_v51, %v2116_v42 }
 0x225   : > { %v957_v24 = vmul.f32 %v2355_v54, %v2355_v54 }
 0x22a   : > { %v448_v7 = vpop.f32.mrf.mxu0 }
 0x22b   : > { %v2372_v59 = vadd.f32 %v448_v7, %v2092_v28 }
 0x22d   : > { %v958_v28 = vmul.f32 %v2372_v59, %v2372_v59 }
 0x231   : > { %v936_v57 = vpop.f32.mrf.mxu2 }
 0x232   : > { %v451_v63 = vpop.f32.mrf.mxu0  ;;  %v2386_v6 = vadd.f32 %v936_v57, %v893_v61 }
 0x233   : > { %v2379_v14 = vadd.f32 %v451_v63, %v2131_v53  ;;  %v1766_v63 = vpack.i.bf16 %v2090_v27, %v2087_v26  ;;  %v272_v27 = vld [vmem:[%s2676_s4] sm:$0xff] }
 0x234   : > { %v996_v53 = vmul.f32 %v2386_v6, %v2386_v6 }
 0x235   : > { %v959_v22 = vmul.f32 %v2379_v14, %v2379_v14 }
 0x239   : > { %v939_v40 = vpop.f32.mrf.mxu2 }
 0x23a   : > { %v2338_v38 = vadd.f32 %v939_v40, %v897_v35 }
 0x23c   : > { %990 = vadd.xlane.f32.xlu0 %v2338_v38  ;;  %v997_v17 = vmul.f32 %v2338_v38, %v2338_v38 }
 0x241   : > { %v942_v25 = vpop.f32.mrf.mxu2 }
 0x242   : > { %v2341_v31 = vadd.f32 %v942_v25, %v901_v36 }
 0x244   : > { %992 = vadd.xlane.f32.xlu0 %v2341_v31  ;;  %v998_v21 = vmul.f32 %v2341_v31, %v2341_v31 }
 0x246   : > { %1004 = vadd.xlane.f32.xlu1 %v998_v21 }
 0x249   : > { %v945_v41 = vpop.f32.mrf.mxu2 }
 0x24a   : > { %v2346_v44 = vadd.f32 %v945_v41, %v905_v34 }
 0x24c   : > { %994 = vadd.xlane.f32.xlu0 %v2346_v44  ;;  %v677_v48 = vpop.f32.mrf.mxu1  ;;  %v999_v4 = vmul.f32 %v2346_v44, %v2346_v44 }
 0x24d   : > { %v2351_v49 = vadd.f32 %v677_v48, %v618_v47 }
 0x24e   : > { %1006 = vadd.xlane.f32.xlu1 %v999_v4 }
 0x24f   : > { %968 = vadd.xlane.f32.xlu2 %v2351_v49  ;;  %v976_v55 = vmul.f32 %v2351_v49, %v2351_v49 }
 0x254   : > { %v680_v56 = vpop.f32.mrf.mxu1 }
 0x255   : > { %v2357_v0 = vadd.f32 %v680_v56, %v622_v45 }
 0x256   : > { %948 = vadd.xlane.f32.xlu1 %v2334_v46 }
 0x257   : > { %962 = vadd.xlane.f32.xlu2 %v957_v24  ;;  %v977_v62 = vmul.f32 %v2357_v0, %v2357_v0 }
 0x259   : > { %982 = vadd.xlane.f32.xlu0 %v977_v62 }
 0x25c   : > { %v683_v37 = vpop.f32.mrf.mxu1 }
 0x25d   : > { %v2366_v42 = vadd.f32 %v683_v37, %v626_v32  ;;  %v2417_v32 = vld [vmem:[%s2677_s5 + $0x8] sm:$0xff] }
 0x25e   : > { %980 = vadd.xlane.f32.xlu1 %v976_v55 }
 0x25f   : > { %970 = vadd.xlane.f32.xlu2 %v2357_v0  ;;  %v978_v50 = vmul.f32 %v2366_v42, %v2366_v42 }
 0x261   : > { %984 = vadd.xlane.f32.xlu0 %v978_v50 }
 0x264   : > { %v686_v58 = vpop.f32.mrf.mxu1 }
 0x265   : > { %v2375_v52 = vadd.f32 %v686_v58, %v630_v39 }
 0x266   : > { %950 = vadd.xlane.f32.xlu1 %v2355_v54 }
 0x267   : > { %952 = vadd.xlane.f32.xlu2 %v2372_v59  ;;  %v979_v15 = vmul.f32 %v2375_v52, %v2375_v52 }
 0x269   : > { %974 = vadd.xlane.f32.xlu0 %v2375_v52 }
 0x26e   : > { %966 = vadd.xlane.f32.xlu1 %v959_v22 }
 0x26f   : > { %964 = vadd.xlane.f32.xlu2 %v958_v28 }
 0x271   : > { %988 = vadd.xlane.f32.xlu0 %v2386_v6 }
 0x276   : > { %986 = vadd.xlane.f32.xlu1 %v979_v15 }
 0x277   : > { %972 = vadd.xlane.f32.xlu2 %v2366_v42 }
 0x27e   : > { %1000 = vadd.xlane.f32.xlu1 %v996_v53 }
 0x27f   : > { %954 = vadd.xlane.f32.xlu2 %v2379_v14 }
 0x285   : > { %1212 = vperm.xlu0 %1762, %v2017_v5  }
 0x287   : > { %1002 = vadd.xlane.f32.xlu2 %v997_v17 }
 0x28d   : > { %1780 = vset.pattern.permute.xlu0 %v1892_v11 }
 0x292   : > { %v961_v20 = vpop.xlane.xlu2 %960 }
 0x297   : > { %1196 = vperm.xlu1 %1761, %v2032_v9  }
 0x29f   : > { %1192 = vperm.xlu2 %1760, %v2017_v5   ;;  %1204 = vperm.xlu1 %1761, %v2047_v13  }
 0x2a7   : > { %1200 = vperm.xlu2 %1760, %v2024_v8   ;;  %1764 = vset.pattern.permute.xlu1 %v1891_v10 }
 0x2a8   : > { %1220 = vperm.xlu1 %1764, %v2024_v8  }
 0x2af   : > { %1763 = vset.pattern.permute.xlu2 %v1891_v10  ;;  %v991_v33 = vpop.xlane.xlu0 %990 }
 0x2b0   : > { %1216 = vperm.xlu2 %1763, %v2032_v9   ;;  %1771 = vset.pattern.permute.xlu1 %v1888_v3 }
 0x2b1   : > { %1767 = vrot.lane.b32.xlu1 %v1766_v63, %s1903_s13 }
 0x2b7   : > { %v993_v60 = vpop.xlane.xlu0 %992 }
 0x2b8   : > { %1224 = vperm.xlu2 %1763, %v2047_v13  }
 0x2b9   : > { %v1005_v18 = vpop.xlane.xlu1 %1004 }
 0x2bf   : > { %v995_v43 = vpop.xlane.xlu0 %994 }
 0x2c0   : > { %1765 = vset.pattern.permute.xlu2 %v1888_v3 }
 0x2c1   : > { %v1007_v5 = vpop.xlane.xlu1 %1006  ;;  %1372 = vperm.xlu2 %1765, %v2047_v13  }
 0x2c2   : > { %v969_v23 = vpop.xlane.xlu2 %968 }
 0x2c9   : > { %v949_v30 = vpop.xlane.xlu1 %948  ;;  %1772 = vset.pattern.permute.xlu2 %v1893_v12 }
 0x2ca   : > { %v963_v8 = vpop.xlane.xlu2 %962  ;;  %1392 = vperm.xlu2 %1772, %v2047_v13   ;;  %v1009_v55 = vsel %vm1008_vm7, %v949_v30, %v961_v20 }
 0x2cb   : > { %v1014_v28 = vsel %vm1013_vm8, %v1009_v55, %v969_v23  ;;  %v273_v23 = vld [vmem:[%s2676_s4 + $0x8] sm:$0xff] }
 0x2cc   : > { %v983_v34 = vpop.xlane.xlu0 %982 }
 0x2d1   : > { %v981_v9 = vpop.xlane.xlu1 %980 }
 0x2d2   : > { %v971_v19 = vpop.xlane.xlu2 %970  ;;  %1778 = vset.pattern.permute.xlu2 %v1888_v3  ;;  %v1019_v20 = vsel %vm1018_vm9, %v1014_v28, %v981_v9  ;;  %v275_v9 = vld [vmem:[%s2676_s4 + $0x18] sm:$0xff] }
 0x2d3   : > { %1364 = vperm.xlu2 %1778, %v2417_v32  }
 0x2d4   : > { %v985_v40 = vpop.xlane.xlu0 %984 }
 0x2d9   : > { %v951_v35 = vpop.xlane.xlu1 %950 }
 0x2da   : > { %v953_v57 = vpop.xlane.xlu2 %952  ;;  %v1010_v47 = vsel %vm1008_vm7, %v951_v35, %v963_v8  ;;  %v274_v8 = vld [vmem:[%s2676_s4 + $0x10] sm:$0xff] }
 0x2db   : > { %1779 = vset.pattern.permute.xlu2 %v1887_v2  ;;  %v1015_v56 = vsel %vm1013_vm8, %v1010_v47, %v971_v19 }
 0x2dc   : > { %v975_v25 = vpop.xlane.xlu0 %974  ;;  %v1020_v58 = vsel %vm1018_vm9, %v1015_v56, %v983_v34 }
 0x2dd   : > { %v1025_v17 = vsel %vm1023_vm10, %v1020_v58, %v991_v33  ;;  %v2450_v33 = vld [vmem:[%s2677_s5 + $0x10] sm:$0xff] }
 0x2de   : > { %1368 = vperm.xlu1 %1771, %v2450_v33  }
 0x2e1   : > { %v967_v13 = vpop.xlane.xlu1 %966 }
 0x2e2   : > { %v965_v39 = vpop.xlane.xlu2 %964 }
 0x2e3   : > { %v1011_v45 = vsel %vm1008_vm7, %v953_v57, %v965_v39 }
 0x2e4   : > { %v989_v61 = vpop.xlane.xlu0 %988 }
 0x2e5   : > { %v1024_v26 = vsel %vm1023_vm10, %v1019_v20, %v989_v61 }
 0x2e9   : > { %v987_v21 = vpop.xlane.xlu1 %986 }
 0x2ea   : > { %v973_v36 = vpop.xlane.xlu2 %972 }
 0x2eb   : > { %v1016_v41 = vsel %vm1013_vm8, %v1011_v45, %v973_v36 }
 0x2ec   : > { %v1021_v4 = vsel %vm1018_vm9, %v1016_v41, %v985_v40  ;;  %v2522_v41 = vld [vmem:[%s2677_s5] sm:$0xff] }
 0x2ed   : > { %v1026_v37 = vsel %vm1023_vm10, %v1021_v4, %v993_v60  ;;  %v1819_v60 = vld [vmem:[%s2075_s10] sm:$0xff]  ;;  %s1910_s10 = smov 1  }
 0x2ee   : > { %v1031_v22 = vsel %vm1028_vm11, %v1026_v37, %v1005_v18  ;;  %v1773_v30 = vpack.i.bf16 %v2095_v29, %v1819_v60 }
 0x2f0   : > { %1774 = vrot.lane.b32.xlu1 %v1773_v30, %s1903_s13 }
 0x2f1   : > { %v1001_v15 = vpop.xlane.xlu1 %1000 }
 0x2f2   : > { %v955_v48 = vpop.xlane.xlu2 %954  ;;  %v1029_v18 = vsel %vm1028_vm11, %v1024_v26, %v1001_v15 }
 0x2f3   : > { %v1012_v51 = vsel %vm1008_vm7, %v955_v48, %v967_v13 }
 0x2f4   : > { %v1017_v24 = vsel %vm1013_vm8, %v1012_v51, %v975_v25 }
 0x2f5   : > { %v1022_v62 = vsel %vm1018_vm9, %v1017_v24, %v987_v21  ;;  %v2512_v21 = vld [vmem:[%s2677_s5 + $0x18] sm:$0xff]  ;;  %vm1435_vm9 = vcmask 916480  }
 0x2f6   : > { %v1027_v7 = vsel %vm1023_vm10, %v1022_v62, %v995_v43 }
 0x2f7   : > { %v1032_v50 = vsel %vm1028_vm11, %v1027_v7, %v1007_v5 }
 0x2f8   : > { %1058 = vmatpush.msra.mxu3 %v1032_v50 }
 0x2fa   : > { %1059 = vmatpush.msra.mxu3 %v1031_v22  ;;  %v1003_v53 = vpop.xlane.xlu2 %1002 }
 0x2fb   : > { %v1030_v5 = vsel %vm1028_vm11, %v1025_v17, %v1003_v53  ;;  %v2553_v53 = vpop.permute.xlu0 %1212 }
 0x2fc   : > { %1060 = vmatpush.msra.mxu3 %v1030_v5  ;;  %2682 = vst [vmem:[#allocation6_spill] sm:$0xff] %v2553_v53 }
 0x2fe   : > { %1061 = vmatpush.msra.mxu3 %v1029_v18 }
 0x2ff   : > { %1578 = vmatmul.msk.f32.vlgmr.msra.gmra.mxu3 %vm1033_vm12, %v272_v27 }
 0x302   : > { %v2487_v35 = vpop.permute.xlu2 %1192 }
 0x307   : > { %1579 = vmatmul.msk.f32.gmra.mxu3 %vm1033_vm12, %v273_v23 }
 0x309   : > { %v2501_v25 = vpop.permute.xlu1 %1196 }
 0x30a   : > { %v2499_v36 = vpop.permute.xlu2 %1200 }
 0x30f   : > { %1580 = vmatmul.msk.f32.gmra.mxu3 %vm1033_vm12, %v274_v8 }
 0x312   : > { %v2507_v45 = vpop.permute.xlu2 %1216 }
 0x313   : > { %2681 = vst [vmem:[#allocation5_spill] sm:$0xff] %v2507_v45 }
 0x317   : > { %1581 = vmatmul.msk.f32.gmra.mxu3 %vm1033_vm12, %v275_v9 }
 0x31a   : > { %v2528_v47 = vpop.permute.xlu2 %1224 }
 0x322   : > { %v2537_v4 = vpop.permute.xlu2 %1372 }
 0x32a   : > { %v2542_v7 = vpop.permute.xlu2 %1392 }
 0x332   : > { %v2547_v55 = vpop.permute.xlu2 %1364 }
 0x382   : > { %v2465_v19 = vpop.f32.mrf.mxu3 }
 0x383   : > { %1320 = vperm.xlu0 %1780, %v2465_v19   ;;  %1236 = vperm.xlu1 %1771, %v2465_v19   ;;  %v1075_v29 = vmul.f32 %v2465_v19, %v2465_v19 }
 0x384   : > { %1101 = vperm.xlu2 %1779, %v2465_v19  }
 0x38a   : > { %v2472_v43 = vpop.f32.mrf.mxu3 }
 0x38b   : > { %1782 = vset.pattern.permute.xlu0 %v1888_v3  ;;  %1781 = vset.pattern.permute.xlu1 %v1887_v2  ;;  %v1076_v57 = vmul.f32 %v2472_v43, %v2472_v43 }
 0x38c   : > { %1083 = vrot.lane.b32.xlu2 %v1075_v29, %s1910_s10  ;;  %1240 = vperm.xlu0 %1782, %v2472_v43  }
 0x38d   : > { %1106 = vperm.xlu1 %1781, %v2472_v43   ;;  %1783 = vset.pattern.permute.xlu2 %v1892_v11 }
 0x392   : > { %v2481_v34 = vpop.f32.mrf.mxu3 }
 0x393   : > { %v1077_v39 = vmul.f32 %v2481_v34, %v2481_v34 }
 0x394   : > { %1324 = vperm.xlu2 %1783, %v2472_v43   ;;  %1085 = vrot.lane.b32.xlu0 %v1076_v57, %s1910_s10 }
 0x395   : > { %1786 = vset.pattern.permute.xlu1 %v1892_v11  ;;  %1784 = vset.pattern.permute.xlu0 %v1887_v2 }
 0x396   : > { %1328 = vperm.xlu1 %1786, %v2481_v34  }
 0x39a   : > { %v2494_v40 = vpop.f32.mrf.mxu3 }
 0x39b   : > { %v1078_v13 = vmul.f32 %v2494_v40, %v2494_v40 }
 0x39c   : > { %1785 = vset.pattern.permute.xlu2 %v1888_v3  ;;  %1111 = vperm.xlu0 %1784, %v2481_v34  }
 0x39d   : > { %1244 = vperm.xlu2 %1785, %v2481_v34  }
 0x39e   : > { %1087 = vrot.lane.b32.xlu1 %v1077_v39, %s1910_s10 }
 0x39f   : > { %1787 = vset.pattern.permute.xlu1 %v1893_v12 }
 0x3a4   : > { %1089 = vrot.lane.b32.xlu0 %v1078_v13, %s1910_s10  ;;  %s1592_s10 = sshll.u32 %s1969_s25, 5  ;;  %s1482_s25 = scalar_lea.sflag [#allocation3], %s242_s11 }
 0x3a5   : > { %1790 = vset.pattern.permute.xlu2 %v1887_v2  ;;  %1793 = vset.pattern.permute.xlu0 %v1892_v11  ;;  %v2517_v2 = vpop.permute.xlu1 %1204  ;;  %s1493_s15 = scalar_lea.hbm %s2678_s6, %s1592_s10 }
 0x3a6   : > { %1388 = vperm.xlu1 %1787, %v2450_v33   ;;  %1116 = vperm.xlu2 %1790, %v2494_v40   ;;  %s1496_s18 = sshll.u32 %s1493_s15, 4  ;;  %s1497_s18 = int_to_ptr.hbm [resolvable:$true] %s1496_s18 }
 0x3a7   : > { %s1836_s19 = sshra.s32 %s1497_s18, 4  ;;  %s1837_s19 = int_to_ptr.hbm [resolvable:$true] %s1836_s19 }
 0x3a8   : > { %s1838_s20 = scalar_lea.hbm %s1837_s19, 32  ;;  %p1843_p0 = scmp.lt.s32.totalorder %s1837_s19, %s2678_s6 }
 0x3a9   : > { %p1839_p11 = scmp.ne.s32.totalorder %s1837_s19, %s1838_s20  ;;  %p1844_p1 = scmp.lt.s32.totalorder %s1842_s29, %s1838_s20 }
 0x3ab   : > { %p1840_p12 = pnand %p1839_p11, %p1986_p5  ;;  %p1845_p2 = por %p1844_p1, %p1843_p0 }
 0x3ac   : > { %1308 = vperm.xlu0 %1793, %v2512_v21  }
 0x3ad   : > { %v2530_v48 = vpop.permute.xlu1 %1220  ;;  %p1841_p13 = pneg %p1840_p12 }
 0x3ae   : > { %1788 = vset.pattern.permute.xlu1 %v1888_v3  ;;  %1792 = vset.pattern.permute.xlu2 %v1892_v11 }
 0x3af   : > { %1360 = vperm.xlu1 %1788, %v2522_v41   ;;  %1332 = vperm.xlu2 %1792, %v2494_v40   ;;  %p1846_p3 = pnand %p1845_p2, %p1841_p13 }
 0x3b4   : > { %1794 = vset.pattern.permute.xlu0 %v1893_v12 }
 0x3b5   : > { %1384 = vperm.xlu0 %1794, %v2417_v32   ;;  %v1768_v51 = vpop.permute.xlu1 %1767 }
 0x3b6   : > { %v1770_v56 = vunpack.i.h.bf16 %v1768_v51  ;;  %v1769_v24 = vunpack.i.l.bf16 %v1768_v51 }
 0x3b7   : > { %1789 = vset.pattern.permute.xlu1 %v1886_v1  ;;  %1796 = vset.pattern.permute.xlu2 %v1891_v10 }
 0x3b8   : > { %1288 = vperm.xlu1 %1789, %v2512_v21   ;;  %v1416_v62 = vsel %vm558_vm2, %v1769_v24, %v1770_v56 }
 0x3b9   : > { %1450 = vmatpush.msrb.mxu0 %v1416_v62  ;;  %1593 = vmatpush.msrb.mxu1 %v1416_v62 }
 0x3ba   : > { %1594 = vmatpush.msrb.mxu2 %v1416_v62  ;;  %1595 = vmatpush.msrb.mxu3 %v1416_v62 }
 0x3bd   : > { %1380 = vperm.xlu0 %1794, %v2522_v41   ;;  %v2544_v37 = vpop.permute.xlu1 %1368 }
 0x3c0   : > { %1284 = vperm.xlu1 %1789, %v2450_v33  }
 0x3c5   : > { %v1775_v50 = vpop.permute.xlu1 %1774 }
 0x3c6   : > { %v1777_v58 = vunpack.i.h.bf16 %v1775_v50  ;;  %v1776_v63 = vunpack.i.l.bf16 %v1775_v50 }
 0x3c8   : > { %1791 = vset.pattern.permute.xlu1 %v1888_v3  ;;  %v1415_v61 = vsel %vm558_vm2, %v1776_v63, %v1777_v58 }
 0x3c9   : > { %1248 = vperm.xlu1 %1791, %v2494_v40   ;;  %1451 = vmatpush.msrb.mxu0 %v1415_v61 }
 0x3ca   : > { %1596 = vmatpush.msrb.mxu1 %v1415_v61  ;;  %1597 = vmatpush.msrb.mxu2 %v1415_v61 }
 0x3cb   : > { %1598 = vmatpush.msrb.mxu3 %v1415_v61 }
 0x3d1   : > { %1795 = vset.pattern.permute.xlu1 %v1886_v1 }
 0x3de   : > { %v2550_v3 = vpop.permute.xlu2 %1101 }
 0x3e6   : > { %v1084_v22 = vpop.permute.xlu2 %1083 }
 0x3e7   : > { %v1095_v28 = vsub.f32 %v2465_v19, %v1084_v22 }
 0x3e9   : > { %v1123_v15 = vadd.f32 1e-05, %v1095_v28 }
 0x3eb   : > { %1809 = vrsqrt.f32 %v1123_v15  ;;  %vm1133_vm14 = vweird.f32 %v1123_v15 }
 0x3f1   : > { %v1810_v17 = vpop.eup %1809 }
 0x3f2   : > { %v1128_v20 = vmul.f32 %v1810_v17, %v1123_v15  ;;  %vm1134_vm13 = vweird.f32 %v1810_v17 }
 0x3f3   : > { %vm1135_vm15 = vmor %vm1133_vm14, %vm1134_vm13 }
 0x3f4   : > { %v1129_v5 = vmul.f32 %v1810_v17, %v1128_v20 }
 0x3f5   : > { %v2555_v26 = vpop.permute.xlu0 %1320  ;;  %v2557_v27 = vpop.permute.xlu1 %1236 }
 0x3f6   : > { %v1130_v18 = vmul.f32 0.5, %v1129_v5 }
 0x3f8   : > { %v1131_v23 = vsub.f32 1.5, %v1130_v18 }
 0x3fa   : > { %v1132_v60 = vmul.f32 %v1810_v17, %v1131_v23 }
 0x3fc   : > { %v1136_v30 = vsel %vm1135_vm15, %v1810_v17, %v1132_v60 }
 0x3fd   : > { %1256 = vperm.xlu2 %1796, %v1136_v30   ;;  %1340 = vperm.xlu0 %1794, %v1136_v30  }
 0x3fe   : > { %1169 = vperm.xlu1 %1795, %v1136_v30   ;;  %v2559_v8 = vpop.permute.xlu0 %1240 }
 0x3ff   : > { %v2561_v9 = vpop.permute.xlu1 %1106 }
 0x405   : > { %1797 = vset.pattern.permute.xlu2 %v1886_v1  ;;  %1802 = vset.pattern.permute.xlu0 %v1886_v1 }
 0x406   : > { %v1086_v19 = vpop.permute.xlu0 %1085 }
 0x407   : > { %v1096_v29 = vsub.f32 %v2472_v43, %v1086_v19 }
 0x408   : > { %v2566_v57 = vpop.permute.xlu1 %1328 }
 0x409   : > { %v1124_v39 = vadd.f32 1e-05, %v1096_v29 }
 0x40b   : > { %1811 = vrsqrt.f32 %v1124_v39  ;;  %vm1143_vm1 = vweird.f32 %v1124_v39 }
 0x40e   : > { %v2568_v13 = vpop.permute.xlu0 %1111 }
 0x410   : > { %v1088_v51 = vpop.permute.xlu1 %1087 }
 0x411   : > { %v1812_v56 = vpop.eup %1811  ;;  %v1097_v24 = vsub.f32 %v2481_v34, %v1088_v51 }
 0x412   : > { %v1138_v62 = vmul.f32 %v1812_v56, %v1124_v39  ;;  %vm1144_vm0 = vweird.f32 %v1812_v56 }
 0x413   : > { %v1125_v50 = vadd.f32 1e-05, %v1097_v24  ;;  %vm1145_vm2 = vmor %vm1143_vm1, %vm1144_vm0 }
 0x414   : > { %v1139_v58 = vmul.f32 %v1812_v56, %v1138_v62 }
 0x415   : > { %1813 = vrsqrt.f32 %v1125_v50  ;;  %vm1153_vm4 = vweird.f32 %v1125_v50 }
 0x416   : > { %v1140_v63 = vmul.f32 0.5, %v1139_v58  ;;  %v1090_v61 = vpop.permute.xlu0 %1089 }
 0x417   : > { %v1098_v22 = vsub.f32 %v2494_v40, %v1090_v61 }
 0x418   : > { %v1141_v28 = vsub.f32 1.5, %v1140_v63 }
 0x419   : > { %v1126_v43 = vadd.f32 1e-05, %v1098_v22 }
 0x41a   : > { %v1142_v15 = vmul.f32 %v1812_v56, %v1141_v28 }
 0x41b   : > { %v1814_v17 = vpop.eup %1813  ;;  %1815 = vrsqrt.f32 %v1126_v43  ;;  %vm1163_vm7 = vweird.f32 %v1126_v43 }
 0x41c   : > { %v1148_v20 = vmul.f32 %v1814_v17, %v1125_v50  ;;  %v1146_v5 = vsel %vm1145_vm2, %v1812_v56, %v1142_v15  ;;  %vm1154_vm3 = vweird.f32 %v1814_v17 }
 0x41d   : > { %1174 = vperm.xlu2 %1797, %v1146_v5   ;;  %vm1155_vm5 = vmor %vm1153_vm4, %vm1154_vm3 }
 0x41e   : > { %v1149_v34 = vmul.f32 %v1814_v17, %v1148_v20  ;;  %v1309_v63 = vpop.permute.xlu0 %1308 }
 0x420   : > { %v1150_v18 = vmul.f32 0.5, %v1149_v34 }
 0x421   : > { %v1816_v23 = vpop.eup %1815 }
 0x422   : > { %v1151_v60 = vsub.f32 1.5, %v1150_v18  ;;  %v1158_v30 = vmul.f32 %v1816_v23, %v1126_v43  ;;  %vm1164_vm6 = vweird.f32 %v1816_v23  ;;  %v1337_v18 = vsub.f32 %v2341_v31, %v2566_v57 }
 0x423   : > { %vm1165_vm8 = vmor %vm1163_vm7, %vm1164_vm6 }
 0x424   : > { %v1159_v19 = vmul.f32 %v1816_v23, %v1158_v30  ;;  %v1152_v40 = vmul.f32 %v1814_v17, %v1151_v60 }
 0x425   : > { %1798 = vset.pattern.permute.xlu2 %v1893_v12 }
 0x426   : > { %v1160_v29 = vmul.f32 0.5, %v1159_v19  ;;  %1344 = vperm.xlu2 %1798, %v1146_v5   ;;  %v1156_v39 = vsel %vm1155_vm5, %v1814_v17, %v1152_v40  ;;  %v1335_v19 = vsub.f32 %v2386_v6, %v2555_v26 }
 0x427   : > { %1179 = vperm.xlu1 %1795, %v1156_v39   ;;  %v1385_v28 = vpop.permute.xlu0 %1384 }
 0x428   : > { %v1161_v51 = vsub.f32 1.5, %v1160_v29 }
 0x42a   : > { %v1162_v56 = vmul.f32 %v1816_v23, %v1161_v51 }
 0x42c   : > { %v1166_v24 = vsel %vm1165_vm8, %v1816_v23, %v1162_v56 }
 0x42d   : > { %1184 = vperm.xlu0 %1802, %v1166_v24  }
 0x42e   : > { %1799 = vset.pattern.permute.xlu2 %v1891_v10 }
 0x42f   : > { %1800 = vset.pattern.permute.xlu1 %v1893_v12  ;;  %1260 = vperm.xlu2 %1799, %v1146_v5   ;;  %v1381_v15 = vpop.permute.xlu0 %1380 }
 0x430   : > { %1348 = vperm.xlu1 %1800, %v1156_v39  }
 0x435   : > { %1803 = vset.pattern.permute.xlu0 %v1893_v12 }
 0x436   : > { %1352 = vperm.xlu0 %1803, %v1166_v24  }
 0x437   : > { %1264 = vperm.xlu2 %1799, %v1156_v39  }
 0x438   : > { %1801 = vset.pattern.permute.xlu1 %v1886_v1  ;;  %v1325_v1 = vpop.permute.xlu2 %1324 }
 0x439   : > { %1280 = vperm.xlu1 %1801, %v2417_v32   ;;  %v1336_v23 = vsub.f32 %v2338_v38, %v1325_v1 }
 0x43e   : > { %1805 = vset.pattern.permute.xlu0 %v1892_v11 }
 0x43f   : > { %1268 = vperm.xlu2 %1799, %v1166_v24   ;;  %1300 = vperm.xlu0 %1805, %v2417_v32  }
 0x440   : > { %v1245_v10 = vpop.permute.xlu2 %1244 }
 0x441   : > { %1276 = vperm.xlu1 %1801, %v2522_v41   ;;  %v1253_v1 = vsub.f32 %v2366_v42, %v1245_v10  ;;  %v1121_v42 = vsub.f32 %v2372_v59, %v2568_v13 }
 0x447   : > { %1804 = vset.pattern.permute.xlu2 %v1892_v11  ;;  %1807 = vset.pattern.permute.xlu0 %v1896_v16  ;;  %v1389_v11 = vpop.permute.xlu1 %1388 }
 0x448   : > { %1304 = vperm.xlu2 %1804, %v2450_v33   ;;  %1424 = vperm.xlu0 %1807, %v2417_v32   ;;  %v1117_v12 = vpop.permute.xlu2 %1116 }
 0x449   : > { %1806 = vset.pattern.permute.xlu1 %v1896_v16 }
 0x44a   : > { %1420 = vperm.xlu1 %1806, %v2522_v41  }
 0x44f   : > { %v1361_v62 = vpop.permute.xlu1 %1360 }
 0x450   : > { %1296 = vperm.xlu2 %1804, %v2522_v41   ;;  %v1333_v50 = vpop.permute.xlu2 %1332 }
 0x451   : > { %v1338_v40 = vsub.f32 %v2346_v44, %v1333_v50 }
 0x452   : > { %1432 = vperm.xlu1 %1806, %v2512_v21  }
 0x457   : > { %v1289_v58 = vpop.permute.xlu1 %1288 }
 0x458   : > { %1808 = vset.pattern.permute.xlu2 %v1896_v16  ;;  %v1257_v32 = vpop.permute.xlu2 %1256 }
 0x459   : > { %1428 = vperm.xlu2 %1808, %v2450_v33  }
 0x45f   : > { %v1285_v22 = vpop.permute.xlu1 %1284 }
 0x467   : > { %v1249_v41 = vpop.permute.xlu1 %1248 }
 0x468   : > { %v1254_v51 = vsub.f32 %v2375_v52, %v1249_v41 }
 0x46f   : > { %v1341_v17 = vpop.permute.xlu0 %1340 }
 0x470   : > { %v2593_v21 = vpop.permute.xlu1 %1169  ;;  %v1355_v56 = vmul.f32 %v1341_v17, %v1335_v19  ;;  %v268_v19 = vld [vmem:[%s2675_s3] sm:$0xff] }
 0x477   : > { %v2591_v61 = vpop.permute.xlu2 %1174 }
 0x480   : > { %v1345_v43 = vpop.permute.xlu2 %1344 }
 0x481   : > { %v1356_v29 = vmul.f32 %v1345_v43, %v1336_v23 }
 0x483   : > { %v1376_v45 = vmul.f32 %v2547_v55, %v1356_v29  ;;  %v1252_v55 = vsub.f32 %v2357_v0, %v2559_v8  ;;  %v1120_v0 = vsub.f32 %v2355_v54, %v2561_v9  ;;  %v269_v29 = vld [vmem:[%s2675_s3 + $0x8] sm:$0xff] }
 0x485   : > { %v1396_v26 = vadd.f32 %v1385_v28, %v1376_v45 }
 0x487   : > { %v1400_v10 = vmax.f32 %v1396_v26, 0.0 }
 0x489   : > { %v1261_v16 = vpop.permute.xlu2 %1260 }
 0x491   : > { %v1265_v20 = vpop.permute.xlu2 %1264 }
 0x492   : > { %v1273_v50 = vmul.f32 %v1265_v20, %v1253_v1 }
 0x499   : > { %v1180_v33 = vpop.permute.xlu1 %1179  ;;  %v1269_v30 = vpop.permute.xlu2 %1268 }
 0x49a   : > { %v1274_v31 = vmul.f32 %v1269_v30, %v1254_v51  ;;  %v271_v30 = vld [vmem:[%s2675_s3 + $0x18] sm:$0xff] }
 0x49c   : > { %v1294_v43 = vmul.f32 %v1289_v58, %v1274_v31 }
 0x49f   : > { %v1185_v5 = vpop.permute.xlu0 %1184 }
 0x4a2   : > { %v1349_v34 = vpop.permute.xlu1 %1348  ;;  %v1305_v41 = vpop.permute.xlu2 %1304 }
 0x4a3   : > { %v1357_v60 = vmul.f32 %v1349_v34, %v1337_v18  ;;  %v1375_v34 = vmul.f32 %v1361_v62, %v1355_v56 }
 0x4a5   : > { %v1377_v24 = vmul.f32 %v2544_v37, %v1357_v60  ;;  %v1251_v37 = vsub.f32 %v2351_v49, %v2557_v27  ;;  %v1293_v27 = vmul.f32 %v1285_v22, %v1273_v50 }
 0x4a7   : > { %v1397_v6 = vadd.f32 %v1389_v11, %v1377_v24  ;;  %v1271_v45 = vmul.f32 %v1257_v32, %v1251_v37  ;;  %v1314_v11 = vadd.f32 %v1309_v63, %v1294_v43  ;;  %v1313_v59 = vadd.f32 %v1305_v41, %v1293_v27 }
 0x4a8   : > { %v1353_v39 = vpop.permute.xlu0 %1352  ;;  %v1119_v32 = vsub.f32 %v2334_v46, %v2550_v3  ;;  %v1188_v63 = vmul.f32 %v2591_v61, %v1120_v0 }
 0x4a9   : > { %v1358_v53 = vmul.f32 %v1353_v39, %v1338_v40  ;;  %v1401_v17 = vmax.f32 %v1397_v6, 0.0  ;;  %v1318_v22 = vmax.f32 %v1314_v11, 0.0  ;;  %v270_v40 = vld [vmem:[%s2675_s3 + $0x10] sm:$0xff] }
 0x4aa   : > { %v1297_v28 = vpop.permute.xlu2 %1296  ;;  %v1208_v46 = vmul.f32 %v2501_v25, %v1188_v63  ;;  %v2684_v25 = vld [vmem:[#allocation6_spill] sm:$0xff] }
 0x4ab   : > { %v1378_v38 = vmul.f32 %v2537_v4, %v1358_v53  ;;  %v1281_v57 = vpop.permute.xlu1 %1280  ;;  %v1122_v4 = vsub.f32 %v2379_v14, %v1117_v12  ;;  %v1395_v53 = vadd.f32 %v1381_v15, %v1375_v34  ;;  %v1189_v14 = vmul.f32 %v1180_v33, %v1121_v42 }
 0x4ac   : > { %v1187_v15 = vmul.f32 %v2593_v21, %v1119_v32  ;;  %v1317_v33 = vmax.f32 %v1313_v59, 0.0 }
 0x4ad   : > { %v1398_v44 = vadd.f32 %v2542_v7, %v1378_v38  ;;  %v1272_v7 = vmul.f32 %v1261_v16, %v1252_v55  ;;  %v1190_v49 = vmul.f32 %v1185_v5, %v1122_v4  ;;  %v1399_v12 = vmax.f32 %v1395_v53, 0.0  ;;  %v2683_v5 = vld [vmem:[#allocation5_spill] sm:$0xff] }
 0x4ae   : > { %v1209_v16 = vmul.f32 %v2499_v36, %v1189_v14  ;;  %v1207_v61 = vmul.f32 %v2487_v35, %v1187_v15  ;;  %v1228_v18 = vadd.f32 %v2683_v5, %v1208_v46 }
 0x4af   : > { %v1402_v52 = vmax.f32 %v1398_v44, 0.0  ;;  %v1292_v13 = vmul.f32 %v1281_v57, %v1272_v7  ;;  %v1210_v54 = vmul.f32 %v2517_v2, %v1190_v49 }
 0x4b0   : > { %v1229_v21 = vadd.f32 %v2530_v48, %v1209_v16  ;;  %v1232_v35 = vmax.f32 %v1228_v18, 0.0 }
 0x4b1   : > { %1452 = vmatpush.msrb.mxu0 %v1402_v52  ;;  %1599 = vmatpush.msrb.mxu1 %v1402_v52  ;;  %v1301_v8 = vpop.permute.xlu0 %1300  ;;  %v1230_v2 = vadd.f32 %v2528_v47, %v1210_v54  ;;  %v1227_v47 = vadd.f32 %v2684_v25, %v1207_v61 }
 0x4b2   : > { %1600 = vmatpush.msrb.mxu2 %v1402_v52  ;;  %1601 = vmatpush.msrb.mxu3 %v1402_v52  ;;  %v1312_v9 = vadd.f32 %v1301_v8, %v1292_v13  ;;  %v1233_v60 = vmax.f32 %v1229_v21, 0.0 }
 0x4b3   : > { %v1277_v62 = vpop.permute.xlu1 %1276  ;;  %1453 = vmatpush.msrb.mxu0 %v1401_v17  ;;  %1602 = vmatpush.msrb.mxu1 %v1401_v17  ;;  %v1234_v23 = vmax.f32 %v1230_v2, 0.0  ;;  %v1231_v48 = vmax.f32 %v1227_v47, 0.0  ;;  %v1429_v57 = vpop.permute.xlu2 %1428 }
 0x4b4   : > { %1603 = vmatpush.msrb.mxu2 %v1401_v17  ;;  %1604 = vmatpush.msrb.mxu3 %v1401_v17  ;;  %v1291_v58 = vmul.f32 %v1277_v62, %v1271_v45  ;;  %v1316_v3 = vmax.f32 %v1312_v9, 0.0 }
 0x4b5   : > { %1454 = vmatpush.msrb.mxu0 %v1400_v10  ;;  %1605 = vmatpush.msrb.mxu1 %v1400_v10 }
 0x4b6   : > { %1606 = vmatpush.msrb.mxu2 %v1400_v10  ;;  %1607 = vmatpush.msrb.mxu3 %v1400_v10  ;;  %v1311_v20 = vadd.f32 %v1297_v28, %v1291_v58 }
 0x4b7   : > { %1455 = vmatpush.msrb.mxu0 %v1399_v12  ;;  %1608 = vmatpush.msrb.mxu1 %v1399_v12 }
 0x4b8   : > { %1609 = vmatpush.msrb.mxu2 %v1399_v12  ;;  %1610 = vmatpush.msrb.mxu3 %v1399_v12  ;;  %v1315_v36 = vmax.f32 %v1311_v20, 0.0 }
 0x4b9   : > { %1456 = vmatpush.msrb.mxu0 %v1318_v22  ;;  %1611 = vmatpush.msrb.mxu1 %v1318_v22 }
 0x4ba   : > { %1612 = vmatpush.msrb.mxu2 %v1318_v22  ;;  %1613 = vmatpush.msrb.mxu3 %v1318_v22  ;;  %v1425_v51 = vpop.permute.xlu0 %1424 }
 0x4bb   : > { %1457 = vmatpush.msrb.mxu0 %v1317_v33  ;;  %1614 = vmatpush.msrb.mxu1 %v1317_v33 }
 0x4bc   : > { %1615 = vmatpush.msrb.mxu2 %v1317_v33  ;;  %1616 = vmatpush.msrb.mxu3 %v1317_v33  ;;  %v1421_v39 = vpop.permute.xlu1 %1420 }
 0x4bd   : > { %1458 = vmatpush.msrb.mxu0 %v1316_v3  ;;  %1617 = vmatpush.msrb.mxu1 %v1316_v3 }
 0x4be   : > { %1618 = vmatpush.msrb.mxu2 %v1316_v3  ;;  %1619 = vmatpush.msrb.mxu3 %v1316_v3 }
 0x4bf   : > { %1459 = vmatpush.msrb.mxu0 %v1315_v36  ;;  %1620 = vmatpush.msrb.mxu1 %v1315_v36 }
 0x4c0   : > { %1621 = vmatpush.msrb.mxu2 %v1315_v36  ;;  %1622 = vmatpush.msrb.mxu3 %v1315_v36 }
 0x4c1   : > { %1460 = vmatpush.msrb.mxu0 %v1234_v23  ;;  %1623 = vmatpush.msrb.mxu1 %v1234_v23 }
 0x4c2   : > { %1624 = vmatpush.msrb.mxu2 %v1234_v23  ;;  %1625 = vmatpush.msrb.mxu3 %v1234_v23 }
 0x4c3   : > { %1461 = vmatpush.msrb.mxu0 %v1233_v60  ;;  %1626 = vmatpush.msrb.mxu1 %v1233_v60 }
 0x4c4   : > { %1627 = vmatpush.msrb.mxu2 %v1233_v60  ;;  %1628 = vmatpush.msrb.mxu3 %v1233_v60  ;;  %v1433_v1 = vpop.permute.xlu1 %1432 }
 0x4c5   : > { %1462 = vmatpush.msrb.mxu0 %v1232_v35  ;;  %1629 = vmatpush.msrb.mxu1 %v1232_v35 }
 0x4c6   : > { %1630 = vmatpush.msrb.mxu2 %v1232_v35  ;;  %1631 = vmatpush.msrb.mxu3 %v1232_v35 }
 0x4c7   : > { %1463 = vmatpush.msrb.mxu0 %v1231_v48  ;;  %1632 = vmatpush.msrb.mxu1 %v1231_v48 }
 0x4c8   : > { %1633 = vmatpush.msrb.mxu2 %v1231_v48  ;;  %1634 = vmatpush.msrb.mxu3 %v1231_v48 }
 0x4c9   : > { %1585 = vmatmul.msk.f32.vlgmr.msrb.gmra.mxu3 %vm1435_vm9, %v271_v30  ;;  %1582 = vmatmul.msk.f32.vlgmr.msrb.gmra.mxu0 %vm1435_vm9, %v268_v19 }
 0x4ca   : > { %1584 = vmatmul.msk.f32.vlgmr.msrb.gmra.mxu2 %vm1435_vm9, %v270_v40  ;;  %1583 = vmatmul.msk.f32.vlgmr.msrb.gmra.mxu1 %vm1435_vm9, %v269_v29 }
 0x546   : > { %v1465_v56 = vpop.f32.mrf.mxu0 }
 0x547   : > { %v1466_v24 = vadd.f32 %v1465_v56, %v1421_v39  ;;  %v1468_v31 = vpop.f32.mrf.mxu1 }
 0x548   : > { %v1469_v38 = vadd.f32 %v1468_v31, %v1425_v51 }
 0x549   : > { %1477 = vst [vmem:[%s244_s16] sm:$0xff] %v1466_v24 }
 0x54a   : > { %1478 = vst [vmem:[%s244_s16 + $0x8] sm:$0xff] %v1469_v38 }
 0x54c   : > { %v1474_v34 = vpop.f32.mrf.mxu3 }
 0x54d   : > { %v1475_v6 = vadd.f32 %v1474_v34, %v1433_v1  ;;  %v1471_v44 = vpop.f32.mrf.mxu2 }
 0x54e   : > { %v1472_v26 = vadd.f32 %v1471_v44, %v1429_v57 }
 0x54f   : > { %1480 = vst [vmem:[%s244_s16 + $0x18] sm:$0xff] %v1475_v6 }
 0x550   : > { %1479 = vst [vmem:[%s244_s16 + $0x10] sm:$0xff] %v1472_v26 }
 0x551   : > { %1849 = shalt.err (!%p1846_p3)
}
 0x552   : > { %s1911_s11 = smov 128   ;;  %s1912_s10 = smov 8  }
 0x553   : > { %1635 = dma.vmem_to_hbm [thread:$0]  (%p1986_p5), %s1495_s17, 512, %s1497_s18, %s1482_s25, %s1911_s11, %s1911_s11, %s1912_s10  }
 0x554 PF: > { %p1641_p4 = scmp.ge.s32.totalorder %s1884_s24, 2  ;;  %s1511_s13 = sand.u32 1, %s1872_s21  }
 0x555   : > { %s1512_s14 = scalar_lea.sflag [#allocation3], %s1511_s13 }
 0x556   : > { %p1638_p7 = pnand %p1641_p4, %p1990_p6 }
 0x558   : > { %p1639_p8 = pneg %p1638_p7 }
 0x55a   : > { %1867 = dma.done.wait (%p1639_p8), %s1512_s14, 512  }
 0x55b   : > { %1869 = vsyncadd (%p1639_p8), %s1512_s14, 4294966784  ;;  %p16_p9 = scmp.ge.s32.totalorder %s1973_s27, 4   ;;  %s2685_s21 = smov %s1876_s22 }
 0x55c   : > { %s2686_s22 = smov %s1880_s23  ;;  %s2687_s23 = smov %s1984_s30 }
 0x55d   : > { %s2688_s24 = smov %s1973_s27  ;;  %18 = sbr.rel (!%p16_p9) target bundleno = 3 (0x3), region = 79 }
 0x562   :  { %1518 = vsyncpa [#allocation3], 1 }
 0x563   :  { %1520 = vsyncpa [#allocation3 + $0x1], 1 }

</bundles_post_ra>
